<compile_context>
chip_gen: v5e
topology: v5e:2x2
jax: 0.10.0
libtpu: 0.0.40
codegen_flags: <defaults>
</compile_context>

<pallas_src>
import math

import jax
import jax.numpy as jnp
from jax.experimental import pallas as pl
from jax.experimental.pallas import tpu as pltpu

EPS = 1e-5  # PyTorch nn.LayerNorm default eps


def _layernorm(v, w, b):
    """f32 LayerNorm over the last axis (biased variance, like PyTorch)."""
    u = jnp.mean(v, axis=-1, keepdims=True)
    c = v - u
    var = jnp.mean(c * c, axis=-1, keepdims=True)
    return c * jax.lax.rsqrt(var + EPS) * w + b


def make_encoder_kernel(n_head):
    """Fused transformer encoder: grid=(batch blocks, layers); activation carried in out_ref."""

    def kernel(x_ref, pos_ref,
               wqkv, bqkv, wo, bo,
               ln1_w, ln1_b,
               wfc, bfc, wproj, bproj,
               ln2_w, ln2_b,
               lnf_w, lnf_b,
               out_ref):
        B, L, D = out_ref.shape
        H = n_head
        hd = D // H

        layer = pl.program_id(1)
        last = layer == pl.num_programs(1) - 1

        # Layer 0: seed the VMEM-resident activation (out_ref) with x + pos_embed.
        @pl.when(layer == 0)
        def _():
            out_ref[...] = x_ref[...] + pos_ref[...]      # pos_ref (1,L,D) broadcasts

        x = out_ref[...].reshape(B * L, D)                # f32 activation carried across layers
        x_bf = x.astype(jnp.bfloat16)

        # ---- fused QKV: one (B*L, D) @ (D, 3D) bf16 matmul, f32 accumulate.
        #      1/sqrt(hd) is already folded into the Wq / bq columns host-side.
        qkv = jnp.dot(x_bf, wqkv[...], preferred_element_type=jnp.float32) + bqkv[...]
        q3 = qkv[:, :D].reshape(B, L, D).astype(jnp.bfloat16)
        k3 = qkv[:, D:2 * D].reshape(B, L, D).astype(jnp.bfloat16)
        v3 = qkv[:, 2 * D:].reshape(B, L, D).astype(jnp.bfloat16)

        # ---- attention: per-head scores / softmax / PV (tiny L x L matmuls); head outputs
        #      concatenated so the out-projection is ONE K=D matmul (not 8 K=hd matmuls).
        head_outs = []
        for h in range(H):
            sl = slice(h * hd, (h + 1) * hd)
            s = jnp.einsum("ble,bme->blm", q3[:, :, sl], k3[:, :, sl],
                           preferred_element_type=jnp.float32)       # (B, L, L) f32
            s = s - jnp.max(s, axis=-1, keepdims=True)
            p = jnp.exp(s)
            p = p * pl.reciprocal(jnp.sum(p, axis=-1, keepdims=True), approx=True)
            head_outs.append(
                jnp.einsum("blm,bme->ble", p.astype(jnp.bfloat16), v3[:, :, sl],
                           preferred_element_type=jnp.float32))      # (B, L, hd)
        o = jnp.concatenate(head_outs, axis=-1).reshape(B * L, D)

        attn = jnp.dot(o.astype(jnp.bfloat16), wo[...],
                       preferred_element_type=jnp.float32) + bo[...]

        # ---- residual + norm1 (post-LN) ----
        x1 = _layernorm(x + attn, ln1_w[...], ln1_b[...])

        # ---- MLP: Linear -> ReLU -> Linear (bf16 MXU, f32 accumulate) ----
        hmid = jnp.dot(x1.astype(jnp.bfloat16), wfc[...],
                       preferred_element_type=jnp.float32) + bfc[...]
        hmid = jnp.maximum(hmid, 0.0)
        mlp = jnp.dot(hmid.astype(jnp.bfloat16), wproj[...],
                      preferred_element_type=jnp.float32) + bproj[...]

        # ---- residual + norm2 (post-LN) ----
        y = _layernorm(x1 + mlp, ln2_w[...], ln2_b[...])

        # Carry y in out_ref across layers; final encoder LayerNorm only on the last layer.
        @pl.when(jnp.logical_not(last))
        def _():
            out_ref[...] = y.reshape(B, L, D)

        @pl.when(last)
        def _():
            out_ref[...] = _layernorm(y, lnf_w[...], lnf_b[...]).reshape(B, L, D)

    return kernel


def _tpu_vmem_capacity_bytes():
    try:
        return int(pltpu.get_tpu_info().vmem_capacity_bytes)
    except Exception:
        return 64 << 20   # conservative (v7x-sized) fallback


def _pick_block_b(n_batch, seq_len, d_model, vmem_cap):
    """Largest divisor of N whose (B,L,D) f32 block stays under a generation-aware byte cap,
    capped at N//2 so the 'parallel' batch axis has >= 2 steps (feeds both v7x TCs)."""
    max_block_bytes = (4 << 20) if vmem_cap <= (64 << 20) else (12 << 20)
    target_rows = 256
    cap_b = max(1, n_batch // 2)
    best = 1
    for b in range(1, cap_b + 1):
        if n_batch % b != 0:
            continue
        if b * seq_len * d_model * 4 > max_block_bytes:
            break
        best = b
        if b * seq_len >= target_rows:
            break
    return best


def prepare_params(raw, n_head):
    """PyTorch-layout raw f32 params -> fused / layer-stacked kernel params.
    Weights become (in,out) bf16, biases/LN affines f32 row vectors; per-layer tensors are
    stacked along a leading layer axis; 1/sqrt(hd) is folded into Wq/bq."""
    D = raw["layers"][0]["out_w"].shape[0]
    hd = D // n_head
    scale = 1.0 / math.sqrt(hd)

    t_bf = lambda w: jnp.asarray(w).T.astype(jnp.bfloat16)   # (out,in) -> (in,out) bf16
    row = lambda b: jnp.asarray(b).reshape(1, -1).astype(jnp.float32)

    def wqkv_of(l):
        wq = l["in_proj_w"][:D] * scale
        wk = l["in_proj_w"][D:2 * D]
        wv = l["in_proj_w"][2 * D:]
        return jnp.concatenate([t_bf(wq), t_bf(wk), t_bf(wv)], axis=1)   # (D, 3D) bf16

    def bqkv_of(l):
        b = l["in_proj_b"]
        return row(jnp.concatenate([b[:D] * scale, b[D:2 * D], b[2 * D:]]))

    stack = lambda fn: jnp.stack([fn(l) for l in raw["layers"]], axis=0)
    return {
        "wqkv": stack(wqkv_of),                       # (NL, D, 3D) bf16
        "bqkv": stack(bqkv_of),                       # (NL, 1, 3D) f32
        "wo": stack(lambda l: t_bf(l["out_w"])),      # (NL, D, D)  bf16
        "bo": stack(lambda l: row(l["out_b"])),
        "ln1_w": stack(lambda l: row(l["ln1_w"])),
        "ln1_b": stack(lambda l: row(l["ln1_b"])),
        "wfc": stack(lambda l: t_bf(l["fc_w"])),      # (NL, D, F)  bf16
        "bfc": stack(lambda l: row(l["fc_b"])),
        "wproj": stack(lambda l: t_bf(l["proj_w"])),  # (NL, F, D)  bf16
        "bproj": stack(lambda l: row(l["proj_b"])),
        "ln2_w": stack(lambda l: row(l["ln2_w"])),
        "ln2_b": stack(lambda l: row(l["ln2_b"])),
        "lnf_w": row(raw["lnf_w"]),                   # (1, D) f32
        "lnf_b": row(raw["lnf_b"]),
        "pos_embed": jnp.asarray(raw["pos_embed"], jnp.float32),   # (1, L, D) f32
    }


def taggregate_img_forward(x, kparams, n_head):
    """Fused TAggregate_img forward. x: (N, clip_length, embed_dim) f32."""
    N, L, D = x.shape
    n_layers = kparams["wqkv"].shape[0]
    F = kparams["wfc"].shape[-1]

    vmem_cap = _tpu_vmem_capacity_bytes()
    block_b = _pick_block_b(N, L, D, vmem_cap)
    vmem_limit = int(min(100 << 20, max(32 << 20, (vmem_cap * 3) // 4)))

    def per_layer(shape):        # layer-stacked operand: leading layer dim squeezed away
        nd = len(shape)
        return pl.BlockSpec((None,) + tuple(shape),
                            lambda n, l, _nd=nd: (l,) + (0,) * _nd)

    def replicated(shape):       # fetched once, constant across the whole grid
        nd = len(shape)
        return pl.BlockSpec(tuple(shape), lambda n, l, _nd=nd: (0,) * _nd)

    in_specs = [
        pl.BlockSpec((block_b, L, D), lambda n, l: (n, 0, 0)),     # x
        replicated(kparams["pos_embed"].shape),                    # pos_embed
        per_layer((D, 3 * D)), per_layer((1, 3 * D)),              # wqkv, bqkv
        per_layer((D, D)), per_layer((1, D)),                      # wo, bo
        per_layer((1, D)), per_layer((1, D)),                      # ln1_w, ln1_b
        per_layer((D, F)), per_layer((1, F)),                      # wfc, bfc
        per_layer((F, D)), per_layer((1, D)),                      # wproj, bproj
        per_layer((1, D)), per_layer((1, D)),                      # ln2_w, ln2_b
        replicated((1, D)), replicated((1, D)),                    # lnf_w, lnf_b
    ]

    return pl.pallas_call(
        make_encoder_kernel(n_head),
        out_shape=jax.ShapeDtypeStruct((N, L, D), jnp.float32),
        grid=(N // block_b, n_layers),
        in_specs=in_specs,
        out_specs=pl.BlockSpec((block_b, L, D), lambda n, l: (n, 0, 0)),
        compiler_params=pltpu.CompilerParams(
            dimension_semantics=("parallel", "arbitrary"),  # batch independent / layers serial
            vmem_limit_bytes=vmem_limit,
        ),
    )(x, kparams["pos_embed"],
      kparams["wqkv"], kparams["bqkv"], kparams["wo"], kparams["bo"],
      kparams["ln1_w"], kparams["ln1_b"],
      kparams["wfc"], kparams["bfc"], kparams["wproj"], kparams["bproj"],
      kparams["ln2_w"], kparams["ln2_b"],
      kparams["lnf_w"], kparams["lnf_b"])


def reference(x, raw, n_head):
    """Pure-JAX f32 reference of the PyTorch forward (eval mode); weights bf16-quantized
    to match the kernel's weight precision (activation math stays f32)."""
    N, L, D = x.shape
    hd = D // n_head
    qw = lambda w: w.astype(jnp.bfloat16).astype(jnp.float32)
    y = x + raw["pos_embed"]
    for l in raw["layers"]:
        wq, wk, wv = l["in_proj_w"][:D], l["in_proj_w"][D:2 * D], l["in_proj_w"][2 * D:]
        bq, bk, bv = l["in_proj_b"][:D], l["in_proj_b"][D:2 * D], l["in_proj_b"][2 * D:]
        q = (y @ qw(wq).T + bq) / math.sqrt(hd)
        k = y @ qw(wk).T + bk
        v = y @ qw(wv).T + bv
        q = q.reshape(N, L, n_head, hd).transpose(0, 2, 1, 3)
        k = k.reshape(N, L, n_head, hd).transpose(0, 2, 1, 3)
        v = v.reshape(N, L, n_head, hd).transpose(0, 2, 1, 3)
        s = jnp.einsum("nhle,nhme->nhlm", q, k)
        p = jax.nn.softmax(s, axis=-1)
        a = jnp.einsum("nhlm,nhme->nhle", p, v).transpose(0, 2, 1, 3).reshape(N, L, D)
        a = a @ qw(l["out_w"]).T + l["out_b"]
        y1 = _layernorm(y + a, l["ln1_w"], l["ln1_b"])
        hmid = jnp.maximum(y1 @ qw(l["fc_w"]).T + l["fc_b"], 0.0)
        y = _layernorm(y1 + hmid @ qw(l["proj_w"]).T + l["proj_b"],
                       l["ln2_w"], l["ln2_b"])
    return _layernorm(y, raw["lnf_w"], raw["lnf_b"])


def init_params(key, d_model, n_head, d_ff, n_layers, clip_length):
    """Deterministic synthetic parameters in PyTorch layout (f32)."""
    D, Fd = d_model, d_ff
    std = 0.02
    keys = jax.random.split(key, n_layers + 1)
    layers = []
    for li in range(n_layers):
        ks = jax.random.split(keys[li], 12)
        layers.append({
            "in_proj_w": std * jax.random.normal(ks[0], (3 * D, D), jnp.float32),
            "in_proj_b": std * jax.random.normal(ks[1], (3 * D,), jnp.float32),
            "out_w": std * jax.random.normal(ks[2], (D, D), jnp.float32),
            "out_b": std * jax.random.normal(ks[3], (D,), jnp.float32),
            "fc_w": std * jax.random.normal(ks[4], (Fd, D), jnp.float32),
            "fc_b": std * jax.random.normal(ks[5], (Fd,), jnp.float32),
            "proj_w": std * jax.random.normal(ks[6], (D, Fd), jnp.float32),
            "proj_b": std * jax.random.normal(ks[7], (D,), jnp.float32),
            # slightly perturbed LN affines so the affine path is actually exercised
            "ln1_w": 1.0 + 0.1 * jax.random.normal(ks[8], (D,), jnp.float32),
            "ln1_b": 0.1 * jax.random.normal(ks[9], (D,), jnp.float32),
            "ln2_w": 1.0 + 0.1 * jax.random.normal(ks[10], (D,), jnp.float32),
            "ln2_b": 0.1 * jax.random.normal(ks[11], (D,), jnp.float32),
        })
    pos_embed = 0.02 * jax.random.normal(keys[-1], (1, clip_length, D), jnp.float32)
    return {
        "layers": layers,
        "lnf_w": jnp.ones((D,), jnp.float32),
        "lnf_b": jnp.zeros((D,), jnp.float32),
        "pos_embed": pos_embed,
    }


if __name__ == "__main__":
    # Small config consistent with the module (nhead=8 is hardcoded there):
    # batch=2, clip_length=8, embed_dim=128 (lane-dense), dim_feedforward=256, 2 layers.
    N, L, D, H, Fd, NLAYERS = 2, 8, 128, 8, 256, 2

    key = jax.random.PRNGKey(0)
    kx, kp = jax.random.split(key)
    x = jax.random.normal(kx, (N, L, D), jnp.float32)
    raw = init_params(kp, D, H, Fd, NLAYERS, L)
    kparams = prepare_params(raw, H)

    out = taggregate_img_forward(x, kparams, H)
    out = jax.block_until_ready(out)

    ref = reference(x, raw, H)
    max_err = float(jnp.max(jnp.abs(out - ref)))
    assert out.shape == (N, L, D), out.shape
    # bf16 MXU activations + approx-reciprocal softmax vs f32 reference (bf16 weights in both)
    assert max_err < 3e-2, f"mismatch vs reference: {max_err}"

    print("KERNEL_OK")
</pallas_src>

<mosaic_0001>
module attributes {stable_mosaic.version = 11 : i64} {
  func.func @kernel(%arg0: i32, %arg1: i32, %arg2: memref<1x8x128xf32, #tpu.memory_space<vmem>>, %arg3: memref<1x8x128xf32, #tpu.memory_space<vmem>>, %arg4: memref<1x128x384xbf16, #tpu.memory_space<vmem>>, %arg5: memref<1x1x384xf32, #tpu.memory_space<vmem>>, %arg6: memref<1x128x128xbf16, #tpu.memory_space<vmem>>, %arg7: memref<1x1x128xf32, #tpu.memory_space<vmem>>, %arg8: memref<1x1x128xf32, #tpu.memory_space<vmem>>, %arg9: memref<1x1x128xf32, #tpu.memory_space<vmem>>, %arg10: memref<1x128x256xbf16, #tpu.memory_space<vmem>>, %arg11: memref<1x1x256xf32, #tpu.memory_space<vmem>>, %arg12: memref<1x256x128xbf16, #tpu.memory_space<vmem>>, %arg13: memref<1x1x128xf32, #tpu.memory_space<vmem>>, %arg14: memref<1x1x128xf32, #tpu.memory_space<vmem>>, %arg15: memref<1x1x128xf32, #tpu.memory_space<vmem>>, %arg16: memref<1x128xf32, #tpu.memory_space<vmem>>, %arg17: memref<1x128xf32, #tpu.memory_space<vmem>>, %arg18: memref<1x8x128xf32, #tpu.memory_space<vmem>>) attributes {dimension_semantics = [#tpu.dimension_semantics<parallel>, #tpu.dimension_semantics<arbitrary>], iteration_bounds = array<i64: 2, 2>, scalar_prefetch = 0 : i64, scratch_operands = 0 : i64, tpu.core_type = #tpu.core_type<tc>, window_params = [{transform_indices = @transform_0, window_bounds = array<i64: 1, 8, 128>}, {pipeline_mode = #tpu.pipeline_mode<synchronous>, transform_indices = @transform_1, window_bounds = array<i64: 1, 8, 128>}, {transform_indices = @transform_2, window_bounds = array<i64: 1, 128, 384>}, {transform_indices = @transform_3, window_bounds = array<i64: 1, 1, 384>}, {transform_indices = @transform_4, window_bounds = array<i64: 1, 128, 128>}, {transform_indices = @transform_5, window_bounds = array<i64: 1, 1, 128>}, {transform_indices = @transform_6, window_bounds = array<i64: 1, 1, 128>}, {transform_indices = @transform_7, window_bounds = array<i64: 1, 1, 128>}, {transform_indices = @transform_8, window_bounds = array<i64: 1, 128, 256>}, {transform_indices = @transform_9, window_bounds = array<i64: 1, 1, 256>}, {transform_indices = @transform_10, window_bounds = array<i64: 1, 256, 128>}, {transform_indices = @transform_11, window_bounds = array<i64: 1, 1, 128>}, {transform_indices = @transform_12, window_bounds = array<i64: 1, 1, 128>}, {transform_indices = @transform_13, window_bounds = array<i64: 1, 1, 128>}, {pipeline_mode = #tpu.pipeline_mode<synchronous>, transform_indices = @transform_14, window_bounds = array<i64: 1, 128>}, {pipeline_mode = #tpu.pipeline_mode<synchronous>, transform_indices = @transform_15, window_bounds = array<i64: 1, 128>}, {transform_indices = @transform_16, window_bounds = array<i64: 1, 8, 128>}]} {
    %c1_i32 = arith.constant 1 : i32
    %0 = arith.cmpi eq, %arg1, %c1_i32 : i32
    %c0_i32 = arith.constant 0 : i32
    %1 = arith.cmpi eq, %arg1, %c0_i32 : i32
    %2 = arith.extui %1 : i1 to i32
    %c0_i32_0 = arith.constant 0 : i32
    %3 = arith.cmpi ne, %2, %c0_i32_0 : i32
    scf.if %3 {
      %c0_87 = arith.constant 0 : index
      %c0_88 = arith.constant 0 : index
      %c0_89 = arith.constant 0 : index
      %234 = vector.load %arg2[%c0_87, %c0_88, %c0_89] : memref<1x8x128xf32, #tpu.memory_space<vmem>>, vector<1x8x128xf32>
      %c0_90 = arith.constant 0 : index
      %c0_91 = arith.constant 0 : index
      %c0_92 = arith.constant 0 : index
      %235 = vector.load %arg3[%c0_90, %c0_91, %c0_92] : memref<1x8x128xf32, #tpu.memory_space<vmem>>, vector<1x8x128xf32>
      %236 = arith.addf %234, %235 : vector<1x8x128xf32>
      %c0_93 = arith.constant 0 : index
      %c0_94 = arith.constant 0 : index
      %c0_95 = arith.constant 0 : index
      %237 = vector.load %arg18[%c0_93, %c0_94, %c0_95] : memref<1x8x128xf32, #tpu.memory_space<vmem>>, vector<1x8x128xf32>
      tpu.vector_store %arg18[%c0_93, %c0_94, %c0_95], %236 {strides = array<i32>} : memref<1x8x128xf32, #tpu.memory_space<vmem>>, vector<1x8x128xf32>,
    } else {
    }
    %c0 = arith.constant 0 : index
    %c0_1 = arith.constant 0 : index
    %c0_2 = arith.constant 0 : index
    %4 = vector.load %arg18[%c0, %c0_1, %c0_2] : memref<1x8x128xf32, #tpu.memory_space<vmem>>, vector<1x8x128xf32>
    %5 = vector.shape_cast %4 : vector<1x8x128xf32> to vector<8x128xf32>
    %6 = arith.truncf %5 : vector<8x128xf32> to vector<8x128xbf16>
    %c0_3 = arith.constant 0 : index
    %c0_4 = arith.constant 0 : index
    %c0_5 = arith.constant 0 : index
    %7 = vector.load %arg4[%c0_3, %c0_4, %c0_5] : memref<1x128x384xbf16, #tpu.memory_space<vmem>>, vector<1x128x384xbf16>
    %8 = vector.shape_cast %7 : vector<1x128x384xbf16> to vector<128x384xbf16>
    %cst = arith.constant dense<0.000000e+00> : vector<8x384xf32>
    %9 = tpu.matmul %6, %8, %cst {dimension_numbers = #tpu.dot_dimension_numbers<[1], [0], [0], [1], [0, 0, 1, 1], [], []>} : vector<8x128xbf16>, vector<128x384xbf16>, vector<8x384xf32> -> vector<8x384xf32>
    %c0_6 = arith.constant 0 : index
    %c0_7 = arith.constant 0 : index
    %c0_8 = arith.constant 0 : index
    %10 = vector.load %arg5[%c0_6, %c0_7, %c0_8] : memref<1x1x384xf32, #tpu.memory_space<vmem>>, vector<1x1x384xf32>
    %11 = vector.shape_cast %10 : vector<1x1x384xf32> to vector<1x384xf32>
    %12 = vector.broadcast %11 : vector<1x384xf32> to vector<8x384xf32>
    %13 = arith.addf %9, %12 : vector<8x384xf32>
    %14 = vector.extract_strided_slice %13 {offsets = [0, 0], sizes = [8, 128], strides = [1, 1]} : vector<8x384xf32> to vector<8x128xf32>
    %15 = vector.shape_cast %14 : vector<8x128xf32> to vector<1x8x128xf32>
    %16 = arith.truncf %15 : vector<1x8x128xf32> to vector<1x8x128xbf16>
    %17 = vector.extract_strided_slice %13 {offsets = [0, 128], sizes = [8, 128], strides = [1, 1]} : vector<8x384xf32> to vector<8x128xf32>
    %18 = vector.shape_cast %17 : vector<8x128xf32> to vector<1x8x128xf32>
    %19 = arith.truncf %18 : vector<1x8x128xf32> to vector<1x8x128xbf16>
    %20 = vector.extract_strided_slice %13 {offsets = [0, 256], sizes = [8, 128], strides = [1, 1]} : vector<8x384xf32> to vector<8x128xf32>
    %21 = vector.shape_cast %20 : vector<8x128xf32> to vector<1x8x128xf32>
    %22 = arith.truncf %21 : vector<1x8x128xf32> to vector<1x8x128xbf16>
    %23 = vector.extract_strided_slice %16 {offsets = [0, 0, 0], sizes = [1, 8, 16], strides = [1, 1, 1]} : vector<1x8x128xbf16> to vector<1x8x16xbf16>
    %24 = vector.extract_strided_slice %19 {offsets = [0, 0, 0], sizes = [1, 8, 16], strides = [1, 1, 1]} : vector<1x8x128xbf16> to vector<1x8x16xbf16>
    "tpu.trace_start"() <{level = 10 : i32, message = "ble,bme->blm"}> : () -> ()
    %cst_9 = arith.constant dense<0.000000e+00> : vector<1x8x8xf32>
    %25 = tpu.matmul %23, %24, %cst_9 {dimension_numbers = #tpu.dot_dimension_numbers<[2], [2], [1], [1], [0, 0, 0, 1, 1, 1], [0], [0]>} : vector<1x8x16xbf16>, vector<1x8x16xbf16>, vector<1x8x8xf32> -> vector<1x8x8xf32>
    "tpu.trace_stop"() : () -> ()
    %cst_10 = arith.constant dense<0xFF800000> : vector<1x8xf32>
    %26 = vector.multi_reduction <maximumf>, %25, %cst_10 [2] : vector<1x8x8xf32> to vector<1x8xf32>
    %27 = vector.shape_cast %26 : vector<1x8xf32> to vector<1x8x1xf32>
    %28 = vector.broadcast %27 : vector<1x8x1xf32> to vector<1x8x8xf32>
    %29 = arith.subf %25, %28 : vector<1x8x8xf32>
    %30 = math.exp %29 : vector<1x8x8xf32>
    %cst_11 = arith.constant dense<0.000000e+00> : vector<1x8xf32>
    %31 = vector.multi_reduction <add>, %30, %cst_11 [2] : vector<1x8x8xf32> to vector<1x8xf32>
    %32 = vector.shape_cast %31 : vector<1x8xf32> to vector<1x8x1xf32>
    %33 = tpu.reciprocal %32 {approx = true} : vector<1x8x1xf32> -> vector<1x8x1xf32>
    %34 = vector.broadcast %33 : vector<1x8x1xf32> to vector<1x8x8xf32>
    %35 = arith.mulf %30, %34 : vector<1x8x8xf32>
    %36 = arith.truncf %35 : vector<1x8x8xf32> to vector<1x8x8xbf16>
    %37 = vector.extract_strided_slice %22 {offsets = [0, 0, 0], sizes = [1, 8, 16], strides = [1, 1, 1]} : vector<1x8x128xbf16> to vector<1x8x16xbf16>
    "tpu.trace_start"() <{level = 10 : i32, message = "blm,bme->ble"}> : () -> ()
    %cst_12 = arith.constant dense<0.000000e+00> : vector<1x8x16xf32>
    %38 = tpu.matmul %36, %37, %cst_12 {dimension_numbers = #tpu.dot_dimension_numbers<[2], [1], [1], [2], [0, 0, 0, 1, 1, 2], [0], [0]>} : vector<1x8x8xbf16>, vector<1x8x16xbf16>, vector<1x8x16xf32> -> vector<1x8x16xf32>
    "tpu.trace_stop"() : () -> ()
    %39 = vector.extract_strided_slice %16 {offsets = [0, 0, 16], sizes = [1, 8, 16], strides = [1, 1, 1]} : vector<1x8x128xbf16> to vector<1x8x16xbf16>
    %40 = vector.extract_strided_slice %19 {offsets = [0, 0, 16], sizes = [1, 8, 16], strides = [1, 1, 1]} : vector<1x8x128xbf16> to vector<1x8x16xbf16>
    "tpu.trace_start"() <{level = 10 : i32, message = "ble,bme->blm"}> : () -> ()
    %cst_13 = arith.constant dense<0.000000e+00> : vector<1x8x8xf32>
    %41 = tpu.matmul %39, %40, %cst_13 {dimension_numbers = #tpu.dot_dimension_numbers<[2], [2], [1], [1], [0, 0, 0, 1, 1, 1], [0], [0]>} : vector<1x8x16xbf16>, vector<1x8x16xbf16>, vector<1x8x8xf32> -> vector<1x8x8xf32>
    "tpu.trace_stop"() : () -> ()
    %cst_14 = arith.constant dense<0xFF800000> : vector<1x8xf32>
    %42 = vector.multi_reduction <maximumf>, %41, %cst_14 [2] : vector<1x8x8xf32> to vector<1x8xf32>
    %43 = vector.shape_cast %42 : vector<1x8xf32> to vector<1x8x1xf32>
    %44 = vector.broadcast %43 : vector<1x8x1xf32> to vector<1x8x8xf32>
    %45 = arith.subf %41, %44 : vector<1x8x8xf32>
    %46 = math.exp %45 : vector<1x8x8xf32>
    %cst_15 = arith.constant dense<0.000000e+00> : vector<1x8xf32>
    %47 = vector.multi_reduction <add>, %46, %cst_15 [2] : vector<1x8x8xf32> to vector<1x8xf32>
    %48 = vector.shape_cast %47 : vector<1x8xf32> to vector<1x8x1xf32>
    %49 = tpu.reciprocal %48 {approx = true} : vector<1x8x1xf32> -> vector<1x8x1xf32>
    %50 = vector.broadcast %49 : vector<1x8x1xf32> to vector<1x8x8xf32>
    %51 = arith.mulf %46, %50 : vector<1x8x8xf32>
    %52 = arith.truncf %51 : vector<1x8x8xf32> to vector<1x8x8xbf16>
    %53 = vector.extract_strided_slice %22 {offsets = [0, 0, 16], sizes = [1, 8, 16], strides = [1, 1, 1]} : vector<1x8x128xbf16> to vector<1x8x16xbf16>
    "tpu.trace_start"() <{level = 10 : i32, message = "blm,bme->ble"}> : () -> ()
    %cst_16 = arith.constant dense<0.000000e+00> : vector<1x8x16xf32>
    %54 = tpu.matmul %52, %53, %cst_16 {dimension_numbers = #tpu.dot_dimension_numbers<[2], [1], [1], [2], [0, 0, 0, 1, 1, 2], [0], [0]>} : vector<1x8x8xbf16>, vector<1x8x16xbf16>, vector<1x8x16xf32> -> vector<1x8x16xf32>
    "tpu.trace_stop"() : () -> ()
    %55 = vector.extract_strided_slice %16 {offsets = [0, 0, 32], sizes = [1, 8, 16], strides = [1, 1, 1]} : vector<1x8x128xbf16> to vector<1x8x16xbf16>
    %56 = vector.extract_strided_slice %19 {offsets = [0, 0, 32], sizes = [1, 8, 16], strides = [1, 1, 1]} : vector<1x8x128xbf16> to vector<1x8x16xbf16>
    "tpu.trace_start"() <{level = 10 : i32, message = "ble,bme->blm"}> : () -> ()
    %cst_17 = arith.constant dense<0.000000e+00> : vector<1x8x8xf32>
    %57 = tpu.matmul %55, %56, %cst_17 {dimension_numbers = #tpu.dot_dimension_numbers<[2], [2], [1], [1], [0, 0, 0, 1, 1, 1], [0], [0]>} : vector<1x8x16xbf16>, vector<1x8x16xbf16>, vector<1x8x8xf32> -> vector<1x8x8xf32>
    "tpu.trace_stop"() : () -> ()
    %cst_18 = arith.constant dense<0xFF800000> : vector<1x8xf32>
    %58 = vector.multi_reduction <maximumf>, %57, %cst_18 [2] : vector<1x8x8xf32> to vector<1x8xf32>
    %59 = vector.shape_cast %58 : vector<1x8xf32> to vector<1x8x1xf32>
    %60 = vector.broadcast %59 : vector<1x8x1xf32> to vector<1x8x8xf32>
    %61 = arith.subf %57, %60 : vector<1x8x8xf32>
    %62 = math.exp %61 : vector<1x8x8xf32>
    %cst_19 = arith.constant dense<0.000000e+00> : vector<1x8xf32>
    %63 = vector.multi_reduction <add>, %62, %cst_19 [2] : vector<1x8x8xf32> to vector<1x8xf32>
    %64 = vector.shape_cast %63 : vector<1x8xf32> to vector<1x8x1xf32>
    %65 = tpu.reciprocal %64 {approx = true} : vector<1x8x1xf32> -> vector<1x8x1xf32>
    %66 = vector.broadcast %65 : vector<1x8x1xf32> to vector<1x8x8xf32>
    %67 = arith.mulf %62, %66 : vector<1x8x8xf32>
    %68 = arith.truncf %67 : vector<1x8x8xf32> to vector<1x8x8xbf16>
    %69 = vector.extract_strided_slice %22 {offsets = [0, 0, 32], sizes = [1, 8, 16], strides = [1, 1, 1]} : vector<1x8x128xbf16> to vector<1x8x16xbf16>
    "tpu.trace_start"() <{level = 10 : i32, message = "blm,bme->ble"}> : () -> ()
    %cst_20 = arith.constant dense<0.000000e+00> : vector<1x8x16xf32>
    %70 = tpu.matmul %68, %69, %cst_20 {dimension_numbers = #tpu.dot_dimension_numbers<[2], [1], [1], [2], [0, 0, 0, 1, 1, 2], [0], [0]>} : vector<1x8x8xbf16>, vector<1x8x16xbf16>, vector<1x8x16xf32> -> vector<1x8x16xf32>
    "tpu.trace_stop"() : () -> ()
    %71 = vector.extract_strided_slice %16 {offsets = [0, 0, 48], sizes = [1, 8, 16], strides = [1, 1, 1]} : vector<1x8x128xbf16> to vector<1x8x16xbf16>
    %72 = vector.extract_strided_slice %19 {offsets = [0, 0, 48], sizes = [1, 8, 16], strides = [1, 1, 1]} : vector<1x8x128xbf16> to vector<1x8x16xbf16>
    "tpu.trace_start"() <{level = 10 : i32, message = "ble,bme->blm"}> : () -> ()
    %cst_21 = arith.constant dense<0.000000e+00> : vector<1x8x8xf32>
    %73 = tpu.matmul %71, %72, %cst_21 {dimension_numbers = #tpu.dot_dimension_numbers<[2], [2], [1], [1], [0, 0, 0, 1, 1, 1], [0], [0]>} : vector<1x8x16xbf16>, vector<1x8x16xbf16>, vector<1x8x8xf32> -> vector<1x8x8xf32>
    "tpu.trace_stop"() : () -> ()
    %cst_22 = arith.constant dense<0xFF800000> : vector<1x8xf32>
    %74 = vector.multi_reduction <maximumf>, %73, %cst_22 [2] : vector<1x8x8xf32> to vector<1x8xf32>
    %75 = vector.shape_cast %74 : vector<1x8xf32> to vector<1x8x1xf32>
    %76 = vector.broadcast %75 : vector<1x8x1xf32> to vector<1x8x8xf32>
    %77 = arith.subf %73, %76 : vector<1x8x8xf32>
    %78 = math.exp %77 : vector<1x8x8xf32>
    %cst_23 = arith.constant dense<0.000000e+00> : vector<1x8xf32>
    %79 = vector.multi_reduction <add>, %78, %cst_23 [2] : vector<1x8x8xf32> to vector<1x8xf32>
    %80 = vector.shape_cast %79 : vector<1x8xf32> to vector<1x8x1xf32>
    %81 = tpu.reciprocal %80 {approx = true} : vector<1x8x1xf32> -> vector<1x8x1xf32>
    %82 = vector.broadcast %81 : vector<1x8x1xf32> to vector<1x8x8xf32>
    %83 = arith.mulf %78, %82 : vector<1x8x8xf32>
    %84 = arith.truncf %83 : vector<1x8x8xf32> to vector<1x8x8xbf16>
    %85 = vector.extract_strided_slice %22 {offsets = [0, 0, 48], sizes = [1, 8, 16], strides = [1, 1, 1]} : vector<1x8x128xbf16> to vector<1x8x16xbf16>
    "tpu.trace_start"() <{level = 10 : i32, message = "blm,bme->ble"}> : () -> ()
    %cst_24 = arith.constant dense<0.000000e+00> : vector<1x8x16xf32>
    %86 = tpu.matmul %84, %85, %cst_24 {dimension_numbers = #tpu.dot_dimension_numbers<[2], [1], [1], [2], [0, 0, 0, 1, 1, 2], [0], [0]>} : vector<1x8x8xbf16>, vector<1x8x16xbf16>, vector<1x8x16xf32> -> vector<1x8x16xf32>
    "tpu.trace_stop"() : () -> ()
    %87 = vector.extract_strided_slice %16 {offsets = [0, 0, 64], sizes = [1, 8, 16], strides = [1, 1, 1]} : vector<1x8x128xbf16> to vector<1x8x16xbf16>
    %88 = vector.extract_strided_slice %19 {offsets = [0, 0, 64], sizes = [1, 8, 16], strides = [1, 1, 1]} : vector<1x8x128xbf16> to vector<1x8x16xbf16>
    "tpu.trace_start"() <{level = 10 : i32, message = "ble,bme->blm"}> : () -> ()
    %cst_25 = arith.constant dense<0.000000e+00> : vector<1x8x8xf32>
    %89 = tpu.matmul %87, %88, %cst_25 {dimension_numbers = #tpu.dot_dimension_numbers<[2], [2], [1], [1], [0, 0, 0, 1, 1, 1], [0], [0]>} : vector<1x8x16xbf16>, vector<1x8x16xbf16>, vector<1x8x8xf32> -> vector<1x8x8xf32>
    "tpu.trace_stop"() : () -> ()
    %cst_26 = arith.constant dense<0xFF800000> : vector<1x8xf32>
    %90 = vector.multi_reduction <maximumf>, %89, %cst_26 [2] : vector<1x8x8xf32> to vector<1x8xf32>
    %91 = vector.shape_cast %90 : vector<1x8xf32> to vector<1x8x1xf32>
    %92 = vector.broadcast %91 : vector<1x8x1xf32> to vector<1x8x8xf32>
    %93 = arith.subf %89, %92 : vector<1x8x8xf32>
    %94 = math.exp %93 : vector<1x8x8xf32>
    %cst_27 = arith.constant dense<0.000000e+00> : vector<1x8xf32>
    %95 = vector.multi_reduction <add>, %94, %cst_27 [2] : vector<1x8x8xf32> to vector<1x8xf32>
    %96 = vector.shape_cast %95 : vector<1x8xf32> to vector<1x8x1xf32>
    %97 = tpu.reciprocal %96 {approx = true} : vector<1x8x1xf32> -> vector<1x8x1xf32>
    %98 = vector.broadcast %97 : vector<1x8x1xf32> to vector<1x8x8xf32>
    %99 = arith.mulf %94, %98 : vector<1x8x8xf32>
    %100 = arith.truncf %99 : vector<1x8x8xf32> to vector<1x8x8xbf16>
    %101 = vector.extract_strided_slice %22 {offsets = [0, 0, 64], sizes = [1, 8, 16], strides = [1, 1, 1]} : vector<1x8x128xbf16> to vector<1x8x16xbf16>
    "tpu.trace_start"() <{level = 10 : i32, message = "blm,bme->ble"}> : () -> ()
    %cst_28 = arith.constant dense<0.000000e+00> : vector<1x8x16xf32>
    %102 = tpu.matmul %100, %101, %cst_28 {dimension_numbers = #tpu.dot_dimension_numbers<[2], [1], [1], [2], [0, 0, 0, 1, 1, 2], [0], [0]>} : vector<1x8x8xbf16>, vector<1x8x16xbf16>, vector<1x8x16xf32> -> vector<1x8x16xf32>
    "tpu.trace_stop"() : () -> ()
    %103 = vector.extract_strided_slice %16 {offsets = [0, 0, 80], sizes = [1, 8, 16], strides = [1, 1, 1]} : vector<1x8x128xbf16> to vector<1x8x16xbf16>
    %104 = vector.extract_strided_slice %19 {offsets = [0, 0, 80], sizes = [1, 8, 16], strides = [1, 1, 1]} : vector<1x8x128xbf16> to vector<1x8x16xbf16>
    "tpu.trace_start"() <{level = 10 : i32, message = "ble,bme->blm"}> : () -> ()
    %cst_29 = arith.constant dense<0.000000e+00> : vector<1x8x8xf32>
    %105 = tpu.matmul %103, %104, %cst_29 {dimension_numbers = #tpu.dot_dimension_numbers<[2], [2], [1], [1], [0, 0, 0, 1, 1, 1], [0], [0]>} : vector<1x8x16xbf16>, vector<1x8x16xbf16>, vector<1x8x8xf32> -> vector<1x8x8xf32>
    "tpu.trace_stop"() : () -> ()
    %cst_30 = arith.constant dense<0xFF800000> : vector<1x8xf32>
    %106 = vector.multi_reduction <maximumf>, %105, %cst_30 [2] : vector<1x8x8xf32> to vector<1x8xf32>
    %107 = vector.shape_cast %106 : vector<1x8xf32> to vector<1x8x1xf32>
    %108 = vector.broadcast %107 : vector<1x8x1xf32> to vector<1x8x8xf32>
    %109 = arith.subf %105, %108 : vector<1x8x8xf32>
    %110 = math.exp %109 : vector<1x8x8xf32>
    %cst_31 = arith.constant dense<0.000000e+00> : vector<1x8xf32>
    %111 = vector.multi_reduction <add>, %110, %cst_31 [2] : vector<1x8x8xf32> to vector<1x8xf32>
    %112 = vector.shape_cast %111 : vector<1x8xf32> to vector<1x8x1xf32>
    %113 = tpu.reciprocal %112 {approx = true} : vector<1x8x1xf32> -> vector<1x8x1xf32>
    %114 = vector.broadcast %113 : vector<1x8x1xf32> to vector<1x8x8xf32>
    %115 = arith.mulf %110, %114 : vector<1x8x8xf32>
    %116 = arith.truncf %115 : vector<1x8x8xf32> to vector<1x8x8xbf16>
    %117 = vector.extract_strided_slice %22 {offsets = [0, 0, 80], sizes = [1, 8, 16], strides = [1, 1, 1]} : vector<1x8x128xbf16> to vector<1x8x16xbf16>
    "tpu.trace_start"() <{level = 10 : i32, message = "blm,bme->ble"}> : () -> ()
    %cst_32 = arith.constant dense<0.000000e+00> : vector<1x8x16xf32>
    %118 = tpu.matmul %116, %117, %cst_32 {dimension_numbers = #tpu.dot_dimension_numbers<[2], [1], [1], [2], [0, 0, 0, 1, 1, 2], [0], [0]>} : vector<1x8x8xbf16>, vector<1x8x16xbf16>, vector<1x8x16xf32> -> vector<1x8x16xf32>
    "tpu.trace_stop"() : () -> ()
    %119 = vector.extract_strided_slice %16 {offsets = [0, 0, 96], sizes = [1, 8, 16], strides = [1, 1, 1]} : vector<1x8x128xbf16> to vector<1x8x16xbf16>
    %120 = vector.extract_strided_slice %19 {offsets = [0, 0, 96], sizes = [1, 8, 16], strides = [1, 1, 1]} : vector<1x8x128xbf16> to vector<1x8x16xbf16>
    "tpu.trace_start"() <{level = 10 : i32, message = "ble,bme->blm"}> : () -> ()
    %cst_33 = arith.constant dense<0.000000e+00> : vector<1x8x8xf32>
    %121 = tpu.matmul %119, %120, %cst_33 {dimension_numbers = #tpu.dot_dimension_numbers<[2], [2], [1], [1], [0, 0, 0, 1, 1, 1], [0], [0]>} : vector<1x8x16xbf16>, vector<1x8x16xbf16>, vector<1x8x8xf32> -> vector<1x8x8xf32>
    "tpu.trace_stop"() : () -> ()
    %cst_34 = arith.constant dense<0xFF800000> : vector<1x8xf32>
    %122 = vector.multi_reduction <maximumf>, %121, %cst_34 [2] : vector<1x8x8xf32> to vector<1x8xf32>
    %123 = vector.shape_cast %122 : vector<1x8xf32> to vector<1x8x1xf32>
    %124 = vector.broadcast %123 : vector<1x8x1xf32> to vector<1x8x8xf32>
    %125 = arith.subf %121, %124 : vector<1x8x8xf32>
    %126 = math.exp %125 : vector<1x8x8xf32>
    %cst_35 = arith.constant dense<0.000000e+00> : vector<1x8xf32>
    %127 = vector.multi_reduction <add>, %126, %cst_35 [2] : vector<1x8x8xf32> to vector<1x8xf32>
    %128 = vector.shape_cast %127 : vector<1x8xf32> to vector<1x8x1xf32>
    %129 = tpu.reciprocal %128 {approx = true} : vector<1x8x1xf32> -> vector<1x8x1xf32>
    %130 = vector.broadcast %129 : vector<1x8x1xf32> to vector<1x8x8xf32>
    %131 = arith.mulf %126, %130 : vector<1x8x8xf32>
    %132 = arith.truncf %131 : vector<1x8x8xf32> to vector<1x8x8xbf16>
    %133 = vector.extract_strided_slice %22 {offsets = [0, 0, 96], sizes = [1, 8, 16], strides = [1, 1, 1]} : vector<1x8x128xbf16> to vector<1x8x16xbf16>
    "tpu.trace_start"() <{level = 10 : i32, message = "blm,bme->ble"}> : () -> ()
    %cst_36 = arith.constant dense<0.000000e+00> : vector<1x8x16xf32>
    %134 = tpu.matmul %132, %133, %cst_36 {dimension_numbers = #tpu.dot_dimension_numbers<[2], [1], [1], [2], [0, 0, 0, 1, 1, 2], [0], [0]>} : vector<1x8x8xbf16>, vector<1x8x16xbf16>, vector<1x8x16xf32> -> vector<1x8x16xf32>
    "tpu.trace_stop"() : () -> ()
    %135 = vector.extract_strided_slice %16 {offsets = [0, 0, 112], sizes = [1, 8, 16], strides = [1, 1, 1]} : vector<1x8x128xbf16> to vector<1x8x16xbf16>
    %136 = vector.extract_strided_slice %19 {offsets = [0, 0, 112], sizes = [1, 8, 16], strides = [1, 1, 1]} : vector<1x8x128xbf16> to vector<1x8x16xbf16>
    "tpu.trace_start"() <{level = 10 : i32, message = "ble,bme->blm"}> : () -> ()
    %cst_37 = arith.constant dense<0.000000e+00> : vector<1x8x8xf32>
    %137 = tpu.matmul %135, %136, %cst_37 {dimension_numbers = #tpu.dot_dimension_numbers<[2], [2], [1], [1], [0, 0, 0, 1, 1, 1], [0], [0]>} : vector<1x8x16xbf16>, vector<1x8x16xbf16>, vector<1x8x8xf32> -> vector<1x8x8xf32>
    "tpu.trace_stop"() : () -> ()
    %cst_38 = arith.constant dense<0xFF800000> : vector<1x8xf32>
    %138 = vector.multi_reduction <maximumf>, %137, %cst_38 [2] : vector<1x8x8xf32> to vector<1x8xf32>
    %139 = vector.shape_cast %138 : vector<1x8xf32> to vector<1x8x1xf32>
    %140 = vector.broadcast %139 : vector<1x8x1xf32> to vector<1x8x8xf32>
    %141 = arith.subf %137, %140 : vector<1x8x8xf32>
    %142 = math.exp %141 : vector<1x8x8xf32>
    %cst_39 = arith.constant dense<0.000000e+00> : vector<1x8xf32>
    %143 = vector.multi_reduction <add>, %142, %cst_39 [2] : vector<1x8x8xf32> to vector<1x8xf32>
    %144 = vector.shape_cast %143 : vector<1x8xf32> to vector<1x8x1xf32>
    %145 = tpu.reciprocal %144 {approx = true} : vector<1x8x1xf32> -> vector<1x8x1xf32>
    %146 = vector.broadcast %145 : vector<1x8x1xf32> to vector<1x8x8xf32>
    %147 = arith.mulf %142, %146 : vector<1x8x8xf32>
    %148 = arith.truncf %147 : vector<1x8x8xf32> to vector<1x8x8xbf16>
    %149 = vector.extract_strided_slice %22 {offsets = [0, 0, 112], sizes = [1, 8, 16], strides = [1, 1, 1]} : vector<1x8x128xbf16> to vector<1x8x16xbf16>
    "tpu.trace_start"() <{level = 10 : i32, message = "blm,bme->ble"}> : () -> ()
    %cst_40 = arith.constant dense<0.000000e+00> : vector<1x8x16xf32>
    %150 = tpu.matmul %148, %149, %cst_40 {dimension_numbers = #tpu.dot_dimension_numbers<[2], [1], [1], [2], [0, 0, 0, 1, 1, 2], [0], [0]>} : vector<1x8x8xbf16>, vector<1x8x16xbf16>, vector<1x8x16xf32> -> vector<1x8x16xf32>
    "tpu.trace_stop"() : () -> ()
    %151 = tpu.concatenate %38, %54, %70, %86, %102, %118, %134, %150 in 2 : vector<1x8x16xf32>, vector<1x8x16xf32>, vector<1x8x16xf32>, vector<1x8x16xf32>, vector<1x8x16xf32>, vector<1x8x16xf32>, vector<1x8x16xf32>, vector<1x8x16xf32> -> vector<1x8x128xf32>
    %152 = vector.shape_cast %151 : vector<1x8x128xf32> to vector<8x128xf32>
    %153 = arith.truncf %152 : vector<8x128xf32> to vector<8x128xbf16>
    %c0_41 = arith.constant 0 : index
    %c0_42 = arith.constant 0 : index
    %c0_43 = arith.constant 0 : index
    %154 = vector.load %arg6[%c0_41, %c0_42, %c0_43] : memref<1x128x128xbf16, #tpu.memory_space<vmem>>, vector<1x128x128xbf16>
    %155 = vector.shape_cast %154 : vector<1x128x128xbf16> to vector<128x128xbf16>
    %cst_44 = arith.constant dense<0.000000e+00> : vector<8x128xf32>
    %156 = tpu.matmul %153, %155, %cst_44 {dimension_numbers = #tpu.dot_dimension_numbers<[1], [0], [0], [1], [0, 0, 1, 1], [], []>} : vector<8x128xbf16>, vector<128x128xbf16>, vector<8x128xf32> -> vector<8x128xf32>
    %c0_45 = arith.constant 0 : index
    %c0_46 = arith.constant 0 : index
    %c0_47 = arith.constant 0 : index
    %157 = vector.load %arg7[%c0_45, %c0_46, %c0_47] : memref<1x1x128xf32, #tpu.memory_space<vmem>>, vector<1x1x128xf32>
    %158 = vector.shape_cast %157 : vector<1x1x128xf32> to vector<1x128xf32>
    %159 = vector.broadcast %158 : vector<1x128xf32> to vector<8x128xf32>
    %160 = arith.addf %156, %159 : vector<8x128xf32>
    %161 = arith.addf %5, %160 : vector<8x128xf32>
    %c0_48 = arith.constant 0 : index
    %c0_49 = arith.constant 0 : index
    %c0_50 = arith.constant 0 : index
    %162 = vector.load %arg8[%c0_48, %c0_49, %c0_50] : memref<1x1x128xf32, #tpu.memory_space<vmem>>, vector<1x1x128xf32>
    %163 = vector.shape_cast %162 : vector<1x1x128xf32> to vector<1x128xf32>
    %c0_51 = arith.constant 0 : index
    %c0_52 = arith.constant 0 : index
    %c0_53 = arith.constant 0 : index
    %164 = vector.load %arg9[%c0_51, %c0_52, %c0_53] : memref<1x1x128xf32, #tpu.memory_space<vmem>>, vector<1x1x128xf32>
    %165 = vector.shape_cast %164 : vector<1x1x128xf32> to vector<1x128xf32>
    %cst_54 = arith.constant dense<0.000000e+00> : vector<8xf32>
    %166 = vector.multi_reduction <add>, %161, %cst_54 [1] : vector<8x128xf32> to vector<8xf32>
    %167 = vector.shape_cast %166 : vector<8xf32> to vector<8x1xf32>
    %cst_55 = arith.constant 1.280000e+02 : f32
    %168 = vector.broadcast %cst_55 : f32 to vector<8x1xf32>
    %169 = arith.divf %167, %168 : vector<8x1xf32>
    %170 = vector.broadcast %169 : vector<8x1xf32> to vector<8x128xf32>
    %171 = arith.subf %161, %170 : vector<8x128xf32>
    %172 = arith.mulf %171, %171 : vector<8x128xf32>
    %cst_56 = arith.constant dense<0.000000e+00> : vector<8xf32>
    %173 = vector.multi_reduction <add>, %172, %cst_56 [1] : vector<8x128xf32> to vector<8xf32>
    %174 = vector.shape_cast %173 : vector<8xf32> to vector<8x1xf32>
    %cst_57 = arith.constant 1.280000e+02 : f32
    %175 = vector.broadcast %cst_57 : f32 to vector<8x1xf32>
    %176 = arith.divf %174, %175 : vector<8x1xf32>
    %cst_58 = arith.constant 9.99999974E-6 : f32
    %177 = vector.broadcast %cst_58 : f32 to vector<8x1xf32>
    %178 = arith.addf %176, %177 : vector<8x1xf32>
    %179 = math.rsqrt %178 : vector<8x1xf32>
    %180 = vector.broadcast %179 : vector<8x1xf32> to vector<8x128xf32>
    %181 = arith.mulf %171, %180 : vector<8x128xf32>
    %182 = vector.broadcast %163 : vector<1x128xf32> to vector<8x128xf32>
    %183 = arith.mulf %181, %182 : vector<8x128xf32>
    %184 = vector.broadcast %165 : vector<1x128xf32> to vector<8x128xf32>
    %185 = arith.addf %183, %184 : vector<8x128xf32>
    %186 = arith.truncf %185 : vector<8x128xf32> to vector<8x128xbf16>
    %c0_59 = arith.constant 0 : index
    %c0_60 = arith.constant 0 : index
    %c0_61 = arith.constant 0 : index
    %187 = vector.load %arg10[%c0_59, %c0_60, %c0_61] : memref<1x128x256xbf16, #tpu.memory_space<vmem>>, vector<1x128x256xbf16>
    %188 = vector.shape_cast %187 : vector<1x128x256xbf16> to vector<128x256xbf16>
    %cst_62 = arith.constant dense<0.000000e+00> : vector<8x256xf32>
    %189 = tpu.matmul %186, %188, %cst_62 {dimension_numbers = #tpu.dot_dimension_numbers<[1], [0], [0], [1], [0, 0, 1, 1], [], []>} : vector<8x128xbf16>, vector<128x256xbf16>, vector<8x256xf32> -> vector<8x256xf32>
    %c0_63 = arith.constant 0 : index
    %c0_64 = arith.constant 0 : index
    %c0_65 = arith.constant 0 : index
    %190 = vector.load %arg11[%c0_63, %c0_64, %c0_65] : memref<1x1x256xf32, #tpu.memory_space<vmem>>, vector<1x1x256xf32>
    %191 = vector.shape_cast %190 : vector<1x1x256xf32> to vector<1x256xf32>
    %192 = vector.broadcast %191 : vector<1x256xf32> to vector<8x256xf32>
    %193 = arith.addf %189, %192 : vector<8x256xf32>
    %cst_66 = arith.constant 0.000000e+00 : f32
    %194 = vector.broadcast %cst_66 : f32 to vector<8x256xf32>
    %195 = arith.maximumf %193, %194 : vector<8x256xf32>
    %196 = arith.truncf %195 : vector<8x256xf32> to vector<8x256xbf16>
    %c0_67 = arith.constant 0 : index
    %c0_68 = arith.constant 0 : index
    %c0_69 = arith.constant 0 : index
    %197 = vector.load %arg12[%c0_67, %c0_68, %c0_69] : memref<1x256x128xbf16, #tpu.memory_space<vmem>>, vector<1x256x128xbf16>
    %198 = vector.shape_cast %197 : vector<1x256x128xbf16> to vector<256x128xbf16>
    %cst_70 = arith.constant dense<0.000000e+00> : vector<8x128xf32>
    %199 = tpu.matmul %196, %198, %cst_70 {dimension_numbers = #tpu.dot_dimension_numbers<[1], [0], [0], [1], [0, 0, 1, 1], [], []>} : vector<8x256xbf16>, vector<256x128xbf16>, vector<8x128xf32> -> vector<8x128xf32>
    %c0_71 = arith.constant 0 : index
    %c0_72 = arith.constant 0 : index
    %c0_73 = arith.constant 0 : index
    %200 = vector.load %arg13[%c0_71, %c0_72, %c0_73] : memref<1x1x128xf32, #tpu.memory_space<vmem>>, vector<1x1x128xf32>
    %201 = vector.shape_cast %200 : vector<1x1x128xf32> to vector<1x128xf32>
    %202 = vector.broadcast %201 : vector<1x128xf32> to vector<8x128xf32>
    %203 = arith.addf %199, %202 : vector<8x128xf32>
    %204 = arith.addf %185, %203 : vector<8x128xf32>
    %c0_74 = arith.constant 0 : index
    %c0_75 = arith.constant 0 : index
    %c0_76 = arith.constant 0 : index
    %205 = vector.load %arg14[%c0_74, %c0_75, %c0_76] : memref<1x1x128xf32, #tpu.memory_space<vmem>>, vector<1x1x128xf32>
    %206 = vector.shape_cast %205 : vector<1x1x128xf32> to vector<1x128xf32>
    %c0_77 = arith.constant 0 : index
    %c0_78 = arith.constant 0 : index
    %c0_79 = arith.constant 0 : index
    %207 = vector.load %arg15[%c0_77, %c0_78, %c0_79] : memref<1x1x128xf32, #tpu.memory_space<vmem>>, vector<1x1x128xf32>
    %208 = vector.shape_cast %207 : vector<1x1x128xf32> to vector<1x128xf32>
    %cst_80 = arith.constant dense<0.000000e+00> : vector<8xf32>
    %209 = vector.multi_reduction <add>, %204, %cst_80 [1] : vector<8x128xf32> to vector<8xf32>
    %210 = vector.shape_cast %209 : vector<8xf32> to vector<8x1xf32>
    %cst_81 = arith.constant 1.280000e+02 : f32
    %211 = vector.broadcast %cst_81 : f32 to vector<8x1xf32>
    %212 = arith.divf %210, %211 : vector<8x1xf32>
    %213 = vector.broadcast %212 : vector<8x1xf32> to vector<8x128xf32>
    %214 = arith.subf %204, %213 : vector<8x128xf32>
    %215 = arith.mulf %214, %214 : vector<8x128xf32>
    %cst_82 = arith.constant dense<0.000000e+00> : vector<8xf32>
    %216 = vector.multi_reduction <add>, %215, %cst_82 [1] : vector<8x128xf32> to vector<8xf32>
    %217 = vector.shape_cast %216 : vector<8xf32> to vector<8x1xf32>
    %cst_83 = arith.constant 1.280000e+02 : f32
    %218 = vector.broadcast %cst_83 : f32 to vector<8x1xf32>
    %219 = arith.divf %217, %218 : vector<8x1xf32>
    %cst_84 = arith.constant 9.99999974E-6 : f32
    %220 = vector.broadcast %cst_84 : f32 to vector<8x1xf32>
    %221 = arith.addf %219, %220 : vector<8x1xf32>
    %222 = math.rsqrt %221 : vector<8x1xf32>
    %223 = vector.broadcast %222 : vector<8x1xf32> to vector<8x128xf32>
    %224 = arith.mulf %214, %223 : vector<8x128xf32>
    %225 = vector.broadcast %206 : vector<1x128xf32> to vector<8x128xf32>
    %226 = arith.mulf %224, %225 : vector<8x128xf32>
    %227 = vector.broadcast %208 : vector<1x128xf32> to vector<8x128xf32>
    %228 = arith.addf %226, %227 : vector<8x128xf32>
    %true = arith.constant true
    %229 = arith.xori %0, %true : i1
    %230 = arith.extui %229 : i1 to i32
    %c0_i32_85 = arith.constant 0 : i32
    %231 = arith.cmpi ne, %230, %c0_i32_85 : i32
    scf.if %231 {
      %234 = vector.shape_cast %228 : vector<8x128xf32> to vector<1x8x128xf32>
      %c0_87 = arith.constant 0 : index
      %c0_88 = arith.constant 0 : index
      %c0_89 = arith.constant 0 : index
      %235 = vector.load %arg18[%c0_87, %c0_88, %c0_89] : memref<1x8x128xf32, #tpu.memory_space<vmem>>, vector<1x8x128xf32>
      tpu.vector_store %arg18[%c0_87, %c0_88, %c0_89], %234 {strides = array<i32>} : memref<1x8x128xf32, #tpu.memory_space<vmem>>, vector<1x8x128xf32>,
    } else {
    }
    %232 = arith.extui %0 : i1 to i32
    %c0_i32_86 = arith.constant 0 : i32
    %233 = arith.cmpi ne, %232, %c0_i32_86 : i32
    scf.if %233 {
      %c0_87 = arith.constant 0 : index
      %c0_88 = arith.constant 0 : index
      %234 = vector.load %arg16[%c0_87, %c0_88] : memref<1x128xf32, #tpu.memory_space<vmem>>, vector<1x128xf32>
      %c0_89 = arith.constant 0 : index
      %c0_90 = arith.constant 0 : index
      %235 = vector.load %arg17[%c0_89, %c0_90] : memref<1x128xf32, #tpu.memory_space<vmem>>, vector<1x128xf32>
      %cst_91 = arith.constant dense<0.000000e+00> : vector<8xf32>
      %236 = vector.multi_reduction <add>, %228, %cst_91 [1] : vector<8x128xf32> to vector<8xf32>
      %237 = vector.shape_cast %236 : vector<8xf32> to vector<8x1xf32>
      %cst_92 = arith.constant 1.280000e+02 : f32
      %238 = vector.broadcast %cst_92 : f32 to vector<8x1xf32>
      %239 = arith.divf %237, %238 : vector<8x1xf32>
      %240 = vector.broadcast %239 : vector<8x1xf32> to vector<8x128xf32>
      %241 = arith.subf %228, %240 : vector<8x128xf32>
      %242 = arith.mulf %241, %241 : vector<8x128xf32>
      %cst_93 = arith.constant dense<0.000000e+00> : vector<8xf32>
      %243 = vector.multi_reduction <add>, %242, %cst_93 [1] : vector<8x128xf32> to vector<8xf32>
      %244 = vector.shape_cast %243 : vector<8xf32> to vector<8x1xf32>
      %cst_94 = arith.constant 1.280000e+02 : f32
      %245 = vector.broadcast %cst_94 : f32 to vector<8x1xf32>
      %246 = arith.divf %244, %245 : vector<8x1xf32>
      %cst_95 = arith.constant 9.99999974E-6 : f32
      %247 = vector.broadcast %cst_95 : f32 to vector<8x1xf32>
      %248 = arith.addf %246, %247 : vector<8x1xf32>
      %249 = math.rsqrt %248 : vector<8x1xf32>
      %250 = vector.broadcast %249 : vector<8x1xf32> to vector<8x128xf32>
      %251 = arith.mulf %241, %250 : vector<8x128xf32>
      %252 = vector.broadcast %234 : vector<1x128xf32> to vector<8x128xf32>
      %253 = arith.mulf %251, %252 : vector<8x128xf32>
      %254 = vector.broadcast %235 : vector<1x128xf32> to vector<8x128xf32>
      %255 = arith.addf %253, %254 : vector<8x128xf32>
      %256 = vector.shape_cast %255 : vector<8x128xf32> to vector<1x8x128xf32>
      %c0_96 = arith.constant 0 : index
      %c0_97 = arith.constant 0 : index
      %c0_98 = arith.constant 0 : index
      %257 = vector.load %arg18[%c0_96, %c0_97, %c0_98] : memref<1x8x128xf32, #tpu.memory_space<vmem>>, vector<1x8x128xf32>
      tpu.vector_store %arg18[%c0_96, %c0_97, %c0_98], %256 {strides = array<i32>} : memref<1x8x128xf32, #tpu.memory_space<vmem>>, vector<1x8x128xf32>,
    } else {
    }
    return
  }
  func.func @transform_0(%arg0: i32, %arg1: i32) -> (i32, i32, i32) {
    %c0_i32 = arith.constant 0 : i32
    %c0_i32_0 = arith.constant 0 : i32
    %c0_i32_1 = arith.constant 0 : i32
    return %arg0, %c0_i32, %c0_i32_0 : i32, i32, i32
  }
  func.func @transform_1(%arg0: i32, %arg1: i32) -> (i32, i32, i32) {
    %c0_i32 = arith.constant 0 : i32
    %c0_i32_0 = arith.constant 0 : i32
    %c0_i32_1 = arith.constant 0 : i32
    %c0_i32_2 = arith.constant 0 : i32
    return %c0_i32, %c0_i32_0, %c0_i32_1 : i32, i32, i32
  }
  func.func @transform_2(%arg0: i32, %arg1: i32) -> (i32, i32, i32) {
    %c0_i32 = arith.constant 0 : i32
    %c0_i32_0 = arith.constant 0 : i32
    %c0_i32_1 = arith.constant 0 : i32
    return %arg1, %c0_i32, %c0_i32_0 : i32, i32, i32
  }
  func.func @transform_3(%arg0: i32, %arg1: i32) -> (i32, i32, i32) {
    %c0_i32 = arith.constant 0 : i32
    %c0_i32_0 = arith.constant 0 : i32
    %c0_i32_1 = arith.constant 0 : i32
    return %arg1, %c0_i32, %c0_i32_0 : i32, i32, i32
  }
  func.func @transform_4(%arg0: i32, %arg1: i32) -> (i32, i32, i32) {
    %c0_i32 = arith.constant 0 : i32
    %c0_i32_0 = arith.constant 0 : i32
    %c0_i32_1 = arith.constant 0 : i32
    return %arg1, %c0_i32, %c0_i32_0 : i32, i32, i32
  }
  func.func @transform_5(%arg0: i32, %arg1: i32) -> (i32, i32, i32) {
    %c0_i32 = arith.constant 0 : i32
    %c0_i32_0 = arith.constant 0 : i32
    %c0_i32_1 = arith.constant 0 : i32
    return %arg1, %c0_i32, %c0_i32_0 : i32, i32, i32
  }
  func.func @transform_6(%arg0: i32, %arg1: i32) -> (i32, i32, i32) {
    %c0_i32 = arith.constant 0 : i32
    %c0_i32_0 = arith.constant 0 : i32
    %c0_i32_1 = arith.constant 0 : i32
    return %arg1, %c0_i32, %c0_i32_0 : i32, i32, i32
  }
  func.func @transform_7(%arg0: i32, %arg1: i32) -> (i32, i32, i32) {
    %c0_i32 = arith.constant 0 : i32
    %c0_i32_0 = arith.constant 0 : i32
    %c0_i32_1 = arith.constant 0 : i32
    return %arg1, %c0_i32, %c0_i32_0 : i32, i32, i32
  }
  func.func @transform_8(%arg0: i32, %arg1: i32) -> (i32, i32, i32) {
    %c0_i32 = arith.constant 0 : i32
    %c0_i32_0 = arith.constant 0 : i32
    %c0_i32_1 = arith.constant 0 : i32
    return %arg1, %c0_i32, %c0_i32_0 : i32, i32, i32
  }
  func.func @transform_9(%arg0: i32, %arg1: i32) -> (i32, i32, i32) {
    %c0_i32 = arith.constant 0 : i32
    %c0_i32_0 = arith.constant 0 : i32
    %c0_i32_1 = arith.constant 0 : i32
    return %arg1, %c0_i32, %c0_i32_0 : i32, i32, i32
  }
  func.func @transform_10(%arg0: i32, %arg1: i32) -> (i32, i32, i32) {
    %c0_i32 = arith.constant 0 : i32
    %c0_i32_0 = arith.constant 0 : i32
    %c0_i32_1 = arith.constant 0 : i32
    return %arg1, %c0_i32, %c0_i32_0 : i32, i32, i32
  }
  func.func @transform_11(%arg0: i32, %arg1: i32) -> (i32, i32, i32) {
    %c0_i32 = arith.constant 0 : i32
    %c0_i32_0 = arith.constant 0 : i32
    %c0_i32_1 = arith.constant 0 : i32
    return %arg1, %c0_i32, %c0_i32_0 : i32, i32, i32
  }
  func.func @transform_12(%arg0: i32, %arg1: i32) -> (i32, i32, i32) {
    %c0_i32 = arith.constant 0 : i32
    %c0_i32_0 = arith.constant 0 : i32
    %c0_i32_1 = arith.constant 0 : i32
    return %arg1, %c0_i32, %c0_i32_0 : i32, i32, i32
  }
  func.func @transform_13(%arg0: i32, %arg1: i32) -> (i32, i32, i32) {
    %c0_i32 = arith.constant 0 : i32
    %c0_i32_0 = arith.constant 0 : i32
    %c0_i32_1 = arith.constant 0 : i32
    return %arg1, %c0_i32, %c0_i32_0 : i32, i32, i32
  }
  func.func @transform_14(%arg0: i32, %arg1: i32) -> (i32, i32) {
    %c0_i32 = arith.constant 0 : i32
    %c0_i32_0 = arith.constant 0 : i32
    %c0_i32_1 = arith.constant 0 : i32
    return %c0_i32, %c0_i32_0 : i32, i32
  }
  func.func @transform_15(%arg0: i32, %arg1: i32) -> (i32, i32) {
    %c0_i32 = arith.constant 0 : i32
    %c0_i32_0 = arith.constant 0 : i32
    %c0_i32_1 = arith.constant 0 : i32
    return %c0_i32, %c0_i32_0 : i32, i32
  }
  func.func @transform_16(%arg0: i32, %arg1: i32) -> (i32, i32, i32) {
    %c0_i32 = arith.constant 0 : i32
    %c0_i32_0 = arith.constant 0 : i32
    %c0_i32_1 = arith.constant 0 : i32
    return %arg0, %c0_i32, %c0_i32_0 : i32, i32, i32
  }
}

</mosaic_0001>

<bundles_post_ra>
// kernel: tpu_custom_call.1
= control target key start
LH: loop header
LB: loop body
LE: loop exit
PB: predicated region body
PF: predicated region fallthrough
CT: control target
= control target key end

     0   :  { %s4098_s0 = inlined_call_operand.hbm [shape: f32[2,8,128], index: 0, kind: input, shape index: {}]   ;;  %s4099_s1 = inlined_call_operand.hbm [shape: f32[1,8,128], index: 1, kind: input, shape index: {}]   ;;  %s4100_s2 = inlined_call_operand.hbm [shape: bf16[2,128,384], index: 2, kind: input, shape index: {}]   ;;  %s4101_s3 = inlined_call_operand.hbm [shape: f32[2,1,384], index: 3, kind: input, shape index: {}]   ;;  %s4102_s4 = inlined_call_operand.hbm [shape: bf16[2,128,128], index: 4, kind: input, shape index: {}]   ;;  %s4103_s5 = inlined_call_operand.vmem [shape: f32[2,1,128], index: 5, kind: input, shape index: {}]   ;;  %s4104_s6 = inlined_call_operand.hbm [shape: f32[2,1,128], index: 6, kind: input, shape index: {}]   ;;  %s4105_s7 = inlined_call_operand.hbm [shape: f32[2,1,128], index: 7, kind: input, shape index: {}]   ;;  %s4106_s8 = inlined_call_operand.hbm [shape: bf16[2,128,256], index: 8, kind: input, shape index: {}]   ;;  %s4107_s9 = inlined_call_operand.vmem [shape: f32[2,1,256], index: 9, kind: input, shape index: {}]   ;;  %s4108_s10 = inlined_call_operand.hbm [shape: bf16[2,256,128], index: 10, kind: input, shape index: {}]   ;;  %s4109_s11 = inlined_call_operand.vmem [shape: f32[2,1,128], index: 11, kind: input, shape index: {}]   ;;  %s4110_s12 = inlined_call_operand.vmem [shape: f32[2,1,128], index: 12, kind: input, shape index: {}]   ;;  %s4111_s13 = inlined_call_operand.vmem [shape: f32[2,1,128], index: 13, kind: input, shape index: {}]   ;;  %s4112_s14 = inlined_call_operand.vmem [shape: f32[1,128], index: 14, kind: input, shape index: {}]   ;;  %s4113_s15 = inlined_call_operand.vmem [shape: f32[1,128], index: 15, kind: input, shape index: {}]   ;;  %s4114_s16 = inlined_call_operand.hbm [shape: f32[2,8,128], index: 16, kind: output, shape index: {}]  }
   0x1   :  { %4132 = sst [smem:[#allocation33_spill]] %s4098_s0 }
   0x2   :  { %4133 = sst [smem:[#allocation34_spill]] %s4099_s1 }
   0x3   :  { %4134 = sst [smem:[#allocation35_spill]] %s4100_s2 }
   0x4   :  { %4135 = sst [smem:[#allocation36_spill]] %s4101_s3 }
   0x5   :  { %4136 = sst [smem:[#allocation37_spill]] %s4102_s4 }
   0x6   :  { %4137 = sst [smem:[#allocation38_spill]] %s4103_s5 }
   0x7   :  { %4138 = sst [smem:[#allocation39_spill]] %s4104_s6 }
   0x8   :  { %4139 = sst [smem:[#allocation40_spill]] %s4105_s7 }
   0x9   :  { %4140 = sst [smem:[#allocation41_spill]] %s4106_s8 }
   0xa   :  { %4141 = sst [smem:[#allocation42_spill]] %s4107_s9 }
   0xb   :  { %4142 = sst [smem:[#allocation43_spill]] %s4108_s10 }
   0xc   :  { %4143 = sst [smem:[#allocation44_spill]] %s4109_s11 }
   0xd   :  { %4144 = sst [smem:[#allocation45_spill]] %s4110_s12 }
   0xe   :  { %4145 = sst [smem:[#allocation46_spill]] %s4111_s13 }
   0xf   :  { %4146 = sst [smem:[#allocation47_spill]] %s4112_s14 }
  0x10   :  { %4147 = sst [smem:[#allocation48_spill]] %s4113_s15 }
  0x11   :  { %4148 = sst [smem:[#allocation49_spill]] %s4114_s16 }
  0x12   :  { %21 = vsyncpa [#allocation3], 0 }
  0x13   :  { %23 = vsyncpa [#allocation3 + $0x1], 0 }
  0x14   :  { %24 = vsyncpa [#allocation6], 0 }
  0x15   :  { %25 = vsyncpa [#allocation4], 0 }
  0x16   :  { %27 = vsyncpa [#allocation4 + $0x1], 0  ;;  %s3469_s21 = smov 0   ;;  %s3471_s22 = smov 0  }
  0x17   :  { %s3473_s23 = smov 0   ;;  %s3475_s24 = smov 0  }
  0x18   :  { %s3477_s25 = smov 0   ;;  %s3479_s26 = smov 0  }
  0x19   :  { %s3481_s27 = smov 0   ;;  %s3483_s28 = smov 0  }
  0x1a   :  { %s3485_s29 = smov 0   ;;  %s3487_s30 = smov 0  }
  0x1b   :  { %s3489_s0 = smov 0  }
  0x1c LB: > { %4149 = sst [smem:[#allocation19_spill]] %s3331_s22  ;;  %s2381_s17 = sadd.s32 4294967294, %s3367_s0   ;;  %s3367_s0 = sphi %s3489_s0, %s33_s0   ;;  %s3363_s30 = sphi %s3487_s30, %s4212_s30   ;;  %s3359_s29 = sphi %s3485_s29, %s4211_s29   ;;  %s3355_s28 = sphi %s3483_s28, %s4210_s28   ;;  %s3351_s27 = sphi %s3481_s27, %s4209_s27   ;;  %s3347_s26 = sphi %s3479_s26, %s4208_s26   ;;  %s3343_s25 = sphi %s3477_s25, %s4214_s25   ;;  %s3339_s24 = sphi %s3475_s24, %s4213_s24   ;;  %s3335_s23 = sphi %s3473_s23, %s4206_s23   ;;  %s3331_s22 = sphi %s3471_s22, %s4205_s22   ;;  %s3327_s21 = sphi %s3469_s21, %s4204_s21  }
  0x1d   : > { %4150 = sst [smem:[#allocation20_spill]] %s3335_s23  ;;  %s42_s18 = sadd.s32 1, %s3359_s29 }
  0x1e   : > { %4151 = sst [smem:[#allocation21_spill]] %s3339_s24  ;;  %p43_p0 = scmp.ge.s32.totalorder %s42_s18, 2 }
  0x1f   : > { %4152 = sst [smem:[#allocation22_spill]] %s3347_s26  ;;  %s45_s19 = sadd.s32 1, %s3363_s30 }
  0x20   : > { %4153 = sst [smem:[#allocation23_spill]] %s3351_s27  ;;  %s52_s20 = sadd.s32 1, %s3347_s26 }
  0x21   : > { %4154 = sst [smem:[#allocation24_spill]] %s3355_s28  ;;  %p59_p1 = scmp.ne.s32.totalorder %s3347_s26, %s3343_s25 }
  0x22   : > { %4155 = sst [smem:[#allocation25_spill]] %s3359_s29  ;;  %s4216_s18 = smov (%p43_p0, %s42_s18), 0 }
  0x23   : > { %4156 = sst [smem:[#allocation26_spill]] %s3363_s30  ;;  %s4218_s19 = smov (!%p43_p0, %s45_s19), %s3363_s30 }
  0x24   : > { %4157 = sst [smem:[#allocation27_spill]] %s3367_s0  ;;  %p60_p2 = scmp.eq.s32.totalorder %s3367_s0, 0 }
  0x25   : > { %4158 = sst [smem:[#allocation28_spill]] %s4216_s18  ;;  %p65_p3 = scmp.ne.s32.totalorder %s3343_s25, %s3339_s24 }
  0x26   : > { %p47_p4 = scmp.ge.s32.totalorder %s4218_s19, 2  ;;  %s96_s16 = ssub.s32 %s3359_s29, %s4216_s18 }
  0x27   : > { %p3541_p5 = por %p60_p2, %p59_p1  ;;  %p97_p6 = scmp.eq.s32.totalorder %s96_s16, 0 }
  0x28   : > { %s4220_s19 = smov (%p47_p4, %s4218_s19), 0  ;;  %s99_s15 = sadd.s32 1, %s3335_s23 }
  0x29   : > { %4160 = sst [smem:[#allocation29_spill]] %s4220_s19  ;;  %p106_p7 = scmp.ne.s32.totalorder %s3335_s23, %s3331_s22 }
  0x2a   : > { %s49_s14 = ssub.s32 %s3363_s30, %s4220_s19  ;;  %p470_p8 = scmp.eq.s32.totalorder %s2381_s17, 3 }
  0x2b   : > { %p50_p9 = scmp.eq.s32.totalorder %s49_s14, 0  ;;  %p3552_p10 = por %p106_p7, %p60_p2 }
  0x2c   : > { %s3557_s18 = scalar_select %p97_p6, %s3335_s23, %s99_s15  }
  0x2d   : > { %s3560_s12 = scalar_select %p50_p9, %s3347_s26, %s52_s20  }
  0x2e   : > { %4162 = sst [smem:[#allocation30_spill]] %s3557_s18  ;;  %p3565_p11 = por %p470_p8, %p65_p3 }
  0x2f   : > { %4163 = sst [smem:[#allocation31_spill]] %s3560_s12  ;;  %p2813_p12 = scmp.lt.s32.totalorder %s3367_s0, 4 }
  0x30   : > { %s4164_s16 = scalar_select %p3565_p11, 1, 0 }
  0x31   : > { %s508_s17 = sand.u32 1, %s3367_s0   ;;  %s510_s14 = sand.u32 1, %s3347_s26  }
  0x32   : > { %4165 = sst [smem:[#allocation32_spill]] %s4164_s16  ;;  %s2385_s19 = sshll.u32 %s510_s14, 3 }
  0x33   : > { %s2386_s11 = sshll.u32 %s3363_s30, 3  ;;  %s4166_s27 = sld [smem:[#allocation33_spill]] }
  0x34   : > { %s512_s18 = scalar_lea.vmem [#allocation2], %s2385_s19  ;;  %p2784_p13 = pnand %p2813_p12, %p3541_p5 }
  0x35   : > { %s520_s1 = sshll.u32 %s512_s18, 4  ;;  %p3580_p0 = pnand %p2813_p12, %p3552_p10  ;;  %s521_s1 = int_to_ptr.vmem [resolvable:$true] %s520_s1 }
  0x36   : > { %s3585_s14 = sand.u32 1, %s3335_s23   ;;  %s2752_s5 = smul.u32 192, %s3359_s29 }
  0x37   : > { %s3588_s9 = scalar_lea.sflag [#allocation3], %s508_s17  ;;  %s4168_s2 = sld [smem:[#allocation35_spill]] }
  0x38   : > { %s2753_s30 = smul.u32 3, %s3585_s14  ;;  %s3369_s17 = smov 192  }
  0x39   : > { %s516_s10 = scalar_lea.hbm %s4166_s27, %s2386_s11  ;;  %s3370_s12 = smov 12  }
  0x3a   : > { %s518_s15 = sshll.u32 %s516_s10, 4  ;;  %s2751_s10 = smul.u32 192, %s3585_s14  ;;  %s519_s15 = int_to_ptr.hbm [resolvable:$true] %s518_s15 }
  0x3b   : > { %2786 = dma.hbm_to_vmem [thread:$0]  (!%p2784_p13), %s519_s15, 128, %s521_s1, %s3588_s9  }
  0x3c   : > { %s531_s18 = scalar_lea.vmem [#allocation7], %s2751_s10  ;;  %s2754_s23 = smul.u32 3, %s3359_s29 }
  0x3d   : > { %s536_s27 = scalar_lea.hbm %s4168_s2, %s2752_s5  ;;  %s539_s19 = sshll.u32 %s531_s18, 4  ;;  %s540_s19 = int_to_ptr.vmem [resolvable:$true] %s539_s19 }
  0x3e   : > { %s537_s28 = sshll.u32 %s536_s27, 4  ;;  %s553_s1 = scalar_lea.vmem [#allocation8], %s2753_s30  ;;  %s538_s28 = int_to_ptr.hbm [resolvable:$true] %s537_s28 }
  0x3f   : > { %2789 = dma.hbm_to_vmem [thread:$0]  (!%p3580_p0), %s538_s28, 3072, %s540_s19, %s3588_s9, %s3369_s17, %s3369_s17, %s3370_s12  }
  0x40   : > { %s561_s15 = sshll.u32 %s553_s1, 4  ;;  %s2388_s11 = sshll.u32 %s3585_s14, 6  ;;  %s562_s15 = int_to_ptr.vmem [resolvable:$true] %s561_s15 }
  0x41   : > { %s4169_s3 = sld [smem:[#allocation36_spill]]  ;;  %s2684_s18 = sshll.u32 %s3359_s29, 6 }
  0x42   : > { %s4170_s4 = sld [smem:[#allocation37_spill]]  ;;  %s572_s28 = scalar_lea.vmem [#allocation9], %s2388_s11 }
  0x43   : > { %s580_s19 = sshll.u32 %s572_s28, 4  ;;  %s4122_s1 = smov 4   ;;  %s581_s19 = int_to_ptr.vmem [resolvable:$true] %s580_s19 }
  0x44   : > { %s4171_s6 = sld [smem:[#allocation39_spill]]  ;;  %s599_s5 = scalar_lea.vmem [#allocation10], %s3585_s14 }
  0x45   : > { %s606_s13 = sshll.u32 %s599_s5, 4  ;;  %s4172_s7 = sld [smem:[#allocation40_spill]]  ;;  %s607_s13 = int_to_ptr.vmem [resolvable:$true] %s606_s13 }
  0x46   : > { %s2685_s2 = sshll.u32 %s3359_s29, 7  ;;  %s4173_s8 = sld [smem:[#allocation41_spill]] }
  0x47   : > { %s557_s10 = scalar_lea.hbm %s4169_s3, %s2754_s23  ;;  %s4121_s23 = smov 64  }
  0x48   : > { %s559_s27 = sshll.u32 %s557_s10, 4  ;;  %s577_s30 = scalar_lea.hbm %s4170_s4, %s2684_s18  ;;  %s560_s27 = int_to_ptr.hbm [resolvable:$true] %s559_s27 }
  0x49   : > { %2792 = dma.hbm_to_vmem [thread:$0]  (!%p3580_p0), %s560_s27, 48, %s562_s15, %s3588_s9  }
  0x4a   : > { %s578_s17 = sshll.u32 %s577_s30, 4  ;;  %s602_s11 = scalar_lea.hbm %s4171_s6, %s3359_s29  ;;  %s579_s17 = int_to_ptr.hbm [resolvable:$true] %s578_s17 }
  0x4b   : > { %2795 = dma.hbm_to_vmem [thread:$0]  (!%p3580_p0), %s579_s17, 1024, %s581_s19, %s3588_s9, %s4121_s23, %s4121_s23, %s4122_s1  }
  0x4c   : > { %s604_s10 = sshll.u32 %s602_s11, 4  ;;  %s619_s12 = scalar_lea.hbm %s4172_s7, %s3359_s29  ;;  %s605_s10 = int_to_ptr.hbm [resolvable:$true] %s604_s10 }
  0x4d   : > { %2798 = dma.hbm_to_vmem [thread:$0]  (!%p3580_p0), %s605_s10, 16, %s607_s13, %s3588_s9  }
  0x4e   : > { %s616_s30 = scalar_lea.vmem [#allocation11], %s3585_s14  ;;  %s621_s19 = sshll.u32 %s619_s12, 4  ;;  %s622_s19 = int_to_ptr.hbm [resolvable:$true] %s621_s19 }
  0x4f   : > { %s623_s28 = sshll.u32 %s616_s30, 4  ;;  %s4123_s17 = sshll.u32 %s3585_s14, 7  ;;  %s624_s28 = int_to_ptr.vmem [resolvable:$true] %s623_s28 }
  0x50   : > { %2801 = dma.hbm_to_vmem [thread:$0]  (!%p3580_p0), %s622_s19, 16, %s624_s28, %s3588_s9  }
  0x51   : > { %s639_s5 = scalar_lea.hbm %s4173_s8, %s2685_s2  ;;  %s634_s13 = scalar_lea.vmem [#allocation12], %s4123_s17 }
  0x52   : > { %s642_s10 = sshll.u32 %s634_s13, 4  ;;  %s640_s27 = sshll.u32 %s639_s5, 4  ;;  %s643_s10 = int_to_ptr.vmem [resolvable:$true] %s642_s10  ;;  %s641_s27 = int_to_ptr.hbm [resolvable:$true] %s640_s27 }
  0x53   : > { %s3373_s18 = smov 128   ;;  %s3374_s12 = smov 8  }
  0x54   : > { %2804 = dma.hbm_to_vmem [thread:$0]  (!%p3580_p0), %s641_s27, 2048, %s643_s10, %s3588_s9, %s3373_s18, %s3373_s18, %s3374_s12  }
  0x55   : > { %s3644_s30 = sadd.s32 4294967295, %s3367_s0   ;;  %p112_p4 = scmp.ne.s32.totalorder %s3331_s22, %s3327_s21 }
  0x56   : > { %p66_p2 = scmp.eq.s32.totalorder %s3644_s30, 0  ;;  %p464_p5 = scmp.eq.s32.totalorder %s3644_s30, 3 }
  0x57   : > { %p2382_p6 = scmp.ge.s32.totalorder %s3367_s0, 1  ;;  %p477_p10 = scmp.lt.s32.totalorder %s3367_s0, 5 }
  0x58   : > { %p3656_p7 = por %p66_p2, %p65_p3  ;;  %p3662_p8 = por %p112_p4, %p66_p2 }
  0x59   : > { %p3669_p9 = por %p464_p5, %p59_p1  ;;  %s4177_s5 = sld [smem:[#allocation34_spill]] }
  0x5a   : > { %p3677_p3 = pnand %p2382_p6, %p477_p10  ;;  %s3375_s27 = smov [#allocation5]  }
  0x5b   : > { %s491_s18 = sshll.u32 %s3375_s27, 4  ;;  %s4179_s1 = sld [smem:[#allocation43_spill]]  ;;  %s492_s18 = int_to_ptr.vmem [resolvable:$true] %s491_s18 }
  0x5c   : > { %p2779_p12 = pneg %p3677_p3  ;;  %s4180_s11 = sshll.u32 %s3585_s14, 7 }
  0x5d   : > { %s4181_s4 = smov 4   ;;  %s4182_s6 = smov 64  }
  0x5e   : > { %p2780_p1 = pnand %p2779_p12, %p66_p2  ;;  %s703_s23 = sand.u32 (!%p3677_p3), 1, %s3644_s30  }
  0x5f   : > { %s489_s13 = sshll.u32 %s4177_s5, 4  ;;  %s663_s5 = scalar_lea.vmem [#allocation13], %s4180_s11  ;;  %s490_s13 = int_to_ptr.hbm [resolvable:$true] %s489_s13 }
  0x60   : > { %s671_s3 = sshll.u32 %s663_s5, 4  ;;  %701 = sbr.rel (%p3677_p3) target bundleno = 2781 (0xadd), region = 84  ;;  %s672_s3 = int_to_ptr.vmem [resolvable:$true] %s671_s3 }
  0x61   : > { %s668_s17 = scalar_lea.hbm %s4179_s1, %s2685_s2  ;;  %s4124_s1 = sand.u32 (!%p3677_p3), 1, %s3343_s25  }
  0x62   : > { %s669_s21 = sshll.u32 %s668_s17, 4  ;;  %s3702_s14 = sshll.u32 (!%p3677_p3), %s4124_s1, 3  ;;  %s670_s21 = int_to_ptr.hbm [resolvable:$true] %s669_s21 }
  0x63   : > { %2782 = dma.hbm_to_vmem [thread:$0]  (!%p2780_p1), %s490_s13, 128, %s492_s18, [#allocation6]  }
  0x64   : > { %2807 = dma.hbm_to_vmem [thread:$0]  (!%p3580_p0), %s670_s21, 2048, %s672_s3, %s3588_s9, %s4182_s6, %s4182_s6, %s4181_s4  }
  0x65   : > { %s704_s17 = scalar_lea.sflag [#allocation3], %s703_s23  ;;  %s707_s2 = scalar_lea.vmem [#allocation2], %s3702_s14 }
  0x66   : > { %3310 = dma.done.wait (%p3656_p7), %s704_s17, 128  }
  0x67   : > { %3312 = vsyncadd (%p3656_p7), %s704_s17, 4294967168 }
  0x68   : > { %3314 = dma.done.wait (%p66_p2), [#allocation6], 128  }
  0x69   : > { %3316 = vsyncadd (%p66_p2), [#allocation6], 4294967168  ;;  %s3714_s3 = sand.u32 1, %s3331_s22  }
  0x6a   : > { %s2755_s4 = smul.u32 192, %s3714_s3 }
  0x6c   : > { %s3717_s6 = scalar_lea.vmem [#allocation7], %s2755_s4 }
  0x6d   : > { %3318 = dma.done.wait (%p3662_p8), %s704_s17, 8272  }
  0x6e   : > { %3320 = vsyncadd (%p3662_p8), %s704_s17, 4294959024  ;;  %s4183_s20 = sld [smem:[#allocation23_spill]]  ;;  %s2756_s9 = smul.u32 3, %s3714_s3 }
  0x6f   : > { %s2400_s30 = sshll.u32 %s3714_s3, 6  ;;  %s2401_s28 = sshll.u32 %s3714_s3, 7 }
  0x70   : > { %s4185_s5 = sld [smem:[#allocation42_spill]]  ;;  %s3752_s0 = scalar_lea.vmem [#allocation8], %s2756_s9 }
  0x71   : > { %s4186_s1 = sld [smem:[#allocation44_spill]]  ;;  %s3754_s18 = scalar_lea.vmem [#allocation9], %s2400_s30 }
  0x72   : > { %s4187_s26 = sld [smem:[#allocation45_spill]]  ;;  %s751_s19 = scalar_lea.vmem [#allocation10], %s3714_s3 }
  0x73   : > { %s4188_s16 = sld [smem:[#allocation46_spill]]  ;;  %s760_s21 = scalar_lea.vmem [#allocation11], %s3714_s3 }
  0x74   : > { %p879_p13 = scmp.lt.s32.totalorder %s4183_s20, 1  ;;  %s3760_s11 = scalar_lea.vmem [#allocation13], %s2401_s28 }
  0x75   : > { %p2405_p0 = scmp.ne.s32.totalorder %s4183_s20, 0 }
  0x76   : > { %s3728_s13 = scalar_select %p879_p13, %s4183_s20, 1 }
  0x77   : > { %900 = sbr.rel (%p2405_p0) target bundleno = 128 (0x80), region = 124 }
  0x78   : > { %s2404_s12 = sshll.u32 %s3728_s13, 1  ;;  %s888_s7 = scalar_lea.vmem %s4186_s1, %s3728_s13 }
  0x79   : > { %s3738_s23 = scalar_lea.vmem %s4185_s5, %s2404_s12  ;;  %s891_s22 = scalar_lea.vmem %s4187_s26, %s3728_s13 }
  0x7a   : > { %s894_s24 = scalar_lea.vmem %s4188_s16, %s3728_s13  ;;  %s3758_s12 = scalar_lea.vmem [#allocation12], %s2401_s28 }
  0x7b   : > { %s3763_s5 = scalar_lea.vmem [#allocation14], %s3702_s14 }
  0x7c   : > { %v901_v0 = vld [vmem:[%s707_s2] sm:$0xff]  ;;  %v902_v1 = vld [vmem:[#allocation5] sm:$0xff] }
  0x7d   : > { %v903_v2 = vadd.f32 %v902_v1, %v901_v0 }
  0x7f   : > { %904 = vst [vmem:[%s3763_s5] sm:$0xff] %v903_v2 }
  0x80 PF: > { %v2492_v3 = vld [vmem:[%s3717_s6 + $0xa8] sm:$0xf]  ;;  %v2709_v4 = vld [vmem:[%s3717_s6 + $0xb0] sm:$0xf0]  ;;  %v2708_v5 = vld [vmem:[%s3717_s6 + $0xac] sm:$0xf] }
  0x81   : > { %v2493_v6 = vor.u32 %v2709_v4, %v2492_v3  ;;  %v2494_v7 = vld [vmem:[%s3717_s6 + $0xb4] sm:$0xf0]  ;;  %v2480_v8 = vld [vmem:[%s3717_s6 + $0x90] sm:$0xf]  ;;  %v2706_v9 = vld [vmem:[%s3717_s6 + $0x98] sm:$0xf0] }
  0x82   : > { %v2497_v10 = vor.u32 %v2708_v5, %v2494_v7  ;;  %v2705_v11 = vld [vmem:[%s3717_s6 + $0x94] sm:$0xf]  ;;  %v2482_v12 = vld [vmem:[%s3717_s6 + $0x9c] sm:$0xf0]  ;;  %v2481_v13 = vor.u32 %v2706_v9, %v2480_v8  ;;  %v2468_v15 = vld [vmem:[%s3717_s6 + $0x78] sm:$0xf] }
  0x83   : > { %1075 = vmatpush.bf16.msra.mxu0 %v2493_v6  ;;  %v2485_v14 = vor.u32 %v2705_v11, %v2482_v12  ;;  %v2703_v16 = vld [vmem:[%s3717_s6 + $0x80] sm:$0xf0]  ;;  %v2702_v17 = vld [vmem:[%s3717_s6 + $0x7c] sm:$0xf]  ;;  %v2470_v18 = vld [vmem:[%s3717_s6 + $0x84] sm:$0xf0] }
  0x84   : > { %1088 = vmatpush.bf16.msra.mxu1 %v2497_v10  ;;  %v2469_v19 = vor.u32 %v2703_v16, %v2468_v15  ;;  %v2473_v20 = vor.u32 %v2702_v17, %v2470_v18  ;;  %v2456_v21 = vld [vmem:[%s3717_s6 + $0x60] sm:$0xf]  ;;  %v2700_v22 = vld [vmem:[%s3717_s6 + $0x68] sm:$0xf0]  ;;  %v2699_v23 = vld [vmem:[%s3717_s6 + $0x64] sm:$0xf] }
  0x85   : > { %v2458_v24 = vld [vmem:[%s3717_s6 + $0x6c] sm:$0xf0]  ;;  %v2457_v25 = vor.u32 %v2700_v22, %v2456_v21  ;;  %v2710_v27 = vld [vmem:[%s3717_s6 + $0xb8] sm:$0xf0]  ;;  %v2488_v28 = vld [vmem:[%s3717_s6 + $0x98] sm:$0xf] }
  0x86   : > { %v2500_v26 = vld [vmem:[%s3717_s6 + $0xb0] sm:$0xf]  ;;  %v2461_v29 = vor.u32 %v2699_v23, %v2458_v24  ;;  %v2444_v30 = vld [vmem:[%s3717_s6 + $0x48] sm:$0xf]  ;;  %v2697_v31 = vld [vmem:[%s3717_s6 + $0x50] sm:$0xf0] }
  0x87   : > { %1076 = vmatpush.bf16.msra.mxu0 %v2481_v13  ;;  %v2501_v32 = vor.u32 %v2710_v27, %v2500_v26  ;;  %v2707_v33 = vld [vmem:[%s3717_s6 + $0xa0] sm:$0xf0]  ;;  %v2696_v34 = vld [vmem:[%s3717_s6 + $0x4c] sm:$0xf]  ;;  %v2446_v35 = vld [vmem:[%s3717_s6 + $0x54] sm:$0xf0]  ;;  %v2445_v37 = vor.u32 %v2697_v31, %v2444_v30 }
  0x88   : > { %1089 = vmatpush.bf16.msra.mxu1 %v2485_v14  ;;  %v2489_v36 = vor.u32 %v2707_v33, %v2488_v28  ;;  %v2432_v38 = vld [vmem:[%s3717_s6 + $0x30] sm:$0xf]  ;;  %v2476_v39 = vld [vmem:[%s3717_s6 + $0x80] sm:$0xf]  ;;  %v2704_v40 = vld [vmem:[%s3717_s6 + $0x88] sm:$0xf0]  ;;  %v2449_v41 = vor.u32 %v2696_v34, %v2446_v35 }
  0x89   : > { %1101 = vmatpush.bf16.msra.mxu2 %v2501_v32  ;;  %v2694_v42 = vld [vmem:[%s3717_s6 + $0x38] sm:$0xf0]  ;;  %v2693_v43 = vld [vmem:[%s3717_s6 + $0x34] sm:$0xf]  ;;  %v2434_v44 = vld [vmem:[%s3717_s6 + $0x3c] sm:$0xf0]  ;;  %v2477_v45 = vor.u32 %v2704_v40, %v2476_v39 }
  0x8a   : > { %v2433_v46 = vor.u32 %v2694_v42, %v2432_v38  ;;  %v2464_v47 = vld [vmem:[%s3717_s6 + $0x68] sm:$0xf]  ;;  %v2701_v48 = vld [vmem:[%s3717_s6 + $0x70] sm:$0xf0]  ;;  %v2437_v49 = vor.u32 %v2693_v43, %v2434_v44  ;;  %v2420_v50 = vld [vmem:[%s3717_s6 + $0x18] sm:$0xf] }
  0x8b   : > { %1077 = vmatpush.bf16.msra.mxu0 %v2469_v19  ;;  %v2691_v51 = vld [vmem:[%s3717_s6 + $0x20] sm:$0xf0]  ;;  %v2690_v52 = vld [vmem:[%s3717_s6 + $0x1c] sm:$0xf]  ;;  %v2422_v53 = vld [vmem:[%s3717_s6 + $0x24] sm:$0xf0]  ;;  %v2465_v54 = vor.u32 %v2701_v48, %v2464_v47 }
  0x8c   : > { %1090 = vmatpush.bf16.msra.mxu1 %v2473_v20  ;;  %v2421_v55 = vor.u32 %v2691_v51, %v2420_v50  ;;  %v2452_v56 = vld [vmem:[%s3717_s6 + $0x50] sm:$0xf]  ;;  %v2698_v57 = vld [vmem:[%s3717_s6 + $0x58] sm:$0xf0]  ;;  %v2425_v58 = vor.u32 %v2690_v52, %v2422_v53  ;;  %v2408_v59 = vld [vmem:[%s3717_s6] sm:$0xf] }
  0x8d   : > { %1102 = vmatpush.bf16.msra.mxu2 %v2489_v36  ;;  %v2688_v60 = vld [vmem:[%s3717_s6 + $0x8] sm:$0xf0]  ;;  %v2687_v61 = vld [vmem:[%s3717_s6 + $0x4] sm:$0xf]  ;;  %v2410_v62 = vld [vmem:[%s3717_s6 + $0xc] sm:$0xf0]  ;;  %v2453_v63 = vor.u32 %v2698_v57, %v2452_v56 }
  0x8e   : > { %v2409_v0 = vor.u32 %v2688_v60, %v2408_v59  ;;  %v3810_v1 = vld [vmem:[%s3763_s5] sm:$0xff]  ;;  %v2695_v3 = vld [vmem:[%s3717_s6 + $0x40] sm:$0xf0]  ;;  %v2413_v4 = vor.u32 %v2687_v61, %v2410_v62  ;;  %v2428_v7 = vld [vmem:[%s3717_s6 + $0x20] sm:$0xf]  ;;  %vm1117_vm0 = vcmask 130048  }
  0x8f   : > { %1078 = vmatpush.bf16.msra.mxu0 %v2457_v25  ;;  %v2440_v2 = vld [vmem:[%s3717_s6 + $0x38] sm:$0xf]  ;;  %v906_v5 = vpack.c.bf16 %v3810_v1, %v3810_v1  ;;  %v2692_v8 = vld [vmem:[%s3717_s6 + $0x28] sm:$0xf0]  ;;  %v2416_v10 = vld [vmem:[%s3717_s6 + $0x8] sm:$0xf] }
  0x90   : > { %1091 = vmatpush.bf16.msra.mxu1 %v2461_v29  ;;  %v2441_v6 = vor.u32 %v2695_v3, %v2440_v2  ;;  %v2429_v9 = vor.u32 %v2692_v8, %v2428_v7  ;;  %v2689_v11 = vld [vmem:[%s3717_s6 + $0x10] sm:$0xf0]  ;;  %v939_v13 = vld [vmem:[%s3752_s0] sm:$0x7]  ;;  %s3376_s8 = smov 96   ;;  %s3377_s26 = smov 112  }
  0x91   : > { %1103 = vmatpush.bf16.msra.mxu2 %v2477_v45  ;;  %v2417_v12 = vor.u32 %v2689_v11, %v2416_v10  ;;  %v941_v14 = vperm.slane %v939_v13, 0  ;;  %v942_v15 = vperm.slane %v939_v13, 1  ;;  %s3378_s29 = smov 80   ;;  %s3379_s0 = smov 64   ;;  %v943_v29 = vperm.slane %v939_v13, 2 }
  0x92   : > { %s3380_s16 = smov 48   ;;  %s3381_s1 = smov 32   ;;  %vm1153_vm1 = vcmask 1043456   ;;  %vm1137_vm2 = vcmask 64512   ;;  %vm1600_vm3 = vcmask 261120   ;;  %vm1602_vm4 = vcmask 392192  }
  0x93   : > { %1079 = vmatpush.bf16.msra.mxu0 %v2445_v37  ;;  %s3382_s14 = smov 16   ;;  %vm1604_vm5 = vcmask 523264   ;;  %vm1606_vm6 = vcmask 654336   ;;  %vm1608_vm7 = vcmask 785408   ;;  %vm1610_vm8 = vcmask 916480   ;;  %s4189_s20 = sld [smem:[#allocation38_spill]] }
  0x94   : > { %1092 = vmatpush.bf16.msra.mxu1 %v2449_v41  ;;  %s4194_s27 = sld [smem:[#allocation23_spill]] }
  0x95   : > { %1104 = vmatpush.bf16.msra.mxu2 %v2465_v54 }
  0x97   : > { %1080 = vmatpush.bf16.msra.mxu0 %v2433_v46 }
  0x98   : > { %1093 = vmatpush.bf16.msra.mxu1 %v2437_v49 }
  0x99   : > { %1105 = vmatpush.bf16.msra.mxu2 %v2453_v63  ;;  %s4190_s9 = scalar_lea.vmem %s4189_s20, %s3728_s13 }
  0x9a   : > { %p2678_p2 = scmp.eq.s32.totalorder %s4194_s27, 1 }
  0x9b   : > { %1081 = vmatpush.bf16.msra.mxu0 %v2421_v55 }
  0x9c   : > { %1094 = vmatpush.bf16.msra.mxu1 %v2425_v58 }
  0x9d   : > { %1106 = vmatpush.bf16.msra.mxu2 %v2441_v6 }
  0x9f   : > { %1082 = vmatpush.bf16.msra.mxu0 %v2409_v0 }
  0xa0   : > { %1095 = vmatpush.bf16.msra.mxu1 %v2413_v4 }
  0xa1   : > { %1107 = vmatpush.bf16.msra.mxu2 %v2429_v9 }
  0xa2   : > { %1083 = vmatmul.bf16.vlgmr.msra.gmra.mxu0 %v906_v5 }
  0xa3   : > { %1096 = vmatmul.bf16.vlgmr.msra.gmra.mxu1 %v906_v5 }
  0xa5   : > { %1108 = vmatpush.bf16.msra.mxu2 %v2417_v12 }
  0xa8   : > { %1109 = vmatmul.bf16.vlgmr.msra.gmra.mxu2 %v906_v5 }
 0x11f   : > { %v1084_v16 = vpop.f32.mrf.mxu0 }
 0x120   : > { %v1097_v17 = vpop.f32.mrf.mxu1  ;;  %v1085_v18 = vadd.f32 %v1084_v16, %v941_v14 }
 0x121   : > { %v1098_v19 = vadd.f32 %v1097_v17, %v942_v15 }
 0x122   : > { %v1114_v21 = vpack.c.bf16 %v1085_v18, %v1085_v18 }
 0x123   : > { %v1115_v20 = vpack.c.bf16 %v1098_v19, %v1098_v19 }
 0x124   : > { %v1171_v27 = vunpack.c.l.b16 %v1114_v21 }
 0x125   : > { %v1176_v22 = vunpack.c.l.b16 %v1115_v20  ;;  %v1122_v23 = vsel %vm1117_vm0, %v1115_v20, 0 }
 0x126   : > { %1131 = vmatpush.bf16.xpose.msra.mxu3 %v1122_v23  ;;  %v1172_v28 = vpack.c.b16 %v1171_v27, %v1171_v27 }
 0x127   : > { %v3822_v24 = vpack.c.b16 %v1176_v22, %v1176_v22  ;;  %v1086_v25 = vpop.f32.mrf.mxu0 }
 0x128   : > { %v1099_v26 = vpop.f32.mrf.mxu1 }
 0x129   : > { %1237 = vrot.lane.b32.xlu2 %v3822_v24, %s3376_s8  ;;  %1178 = vrot.lane.b32.xlu1 %v3822_v24, %s3377_s26 }
 0x12b   : > { %v1110_v30 = vpop.f32.mrf.mxu2 }
 0x12c   : > { %v1111_v31 = vadd.f32 %v1110_v30, %v943_v29 }
 0x12d   : > { %2502 = vmatmul.msk.bf16.vlgmr.msra.gmra.mxu3 %vm1117_vm0, %v1114_v21 }
 0x12e   : > { %v3843_v32 = vpack.c.bf16 %v1111_v31, %v1111_v31 }
 0x130   : > { %v1155_v33 = vsel %vm1153_vm1, %v3843_v32, 0  ;;  %v1212_v20 = vunpack.c.l.b16 %v3843_v32 }
 0x131   : > { %1293 = vrot.lane.b32.xlu2 %v3822_v24, %s3378_s29  ;;  %1173 = vrot.lane.b32.xlu1 %v1172_v28, %s3377_s26 }
 0x132   : > { %1164 = vmatpush.bf16.msrb.mxu3 %v1155_v33  ;;  %v3877_v22 = vpack.c.b16 %v1212_v20, %v1212_v20 }
 0x133   : > { %v1112_v34 = vpop.f32.mrf.mxu2 }
 0x139   : > { %1349 = vrot.lane.b32.xlu2 %v3822_v24, %s3379_s0  ;;  %1291 = vrot.lane.b32.xlu1 %v1172_v28, %s3378_s29 }
 0x141   : > { %1347 = vrot.lane.b32.xlu2 %v1172_v28, %s3379_s0  ;;  %1405 = vrot.lane.b32.xlu1 %v3822_v24, %s3380_s16 }
 0x149   : > { %1461 = vrot.lane.b32.xlu2 %v3822_v24, %s3381_s1  ;;  %1403 = vrot.lane.b32.xlu1 %v1172_v28, %s3380_s16 }
 0x151   : > { %1515 = vrot.lane.b32.xlu2 %v1172_v28, %s3382_s14  ;;  %1459 = vrot.lane.b32.xlu1 %v1172_v28, %s3381_s1 }
 0x183   : > { %v1238_v35 = vpop.permute.xlu2 %1237 }
 0x184   : > { %v1243_v36 = vsel %vm1117_vm0, %v1238_v35, 0 }
 0x185   : > { %1252 = vmatpush.bf16.xpose.msrb.mxu2 %v1243_v36 }
 0x18b   : > { %v1294_v37 = vpop.permute.xlu2 %1293 }
 0x18c   : > { %v1299_v4 = vsel %vm1117_vm0, %v1294_v37, 0 }
 0x193   : > { %v1350_v38 = vpop.permute.xlu2 %1349 }
 0x194   : > { %v1355_v39 = vsel %vm1117_vm0, %v1350_v38, 0 }
 0x195   : > { %1364 = vmatpush.bf16.xpose.msrb.mxu1 %v1355_v39 }
 0x19b   : > { %v1179_v40 = vpop.permute.xlu1 %1178  ;;  %v1348_v41 = vpop.permute.xlu2 %1347 }
 0x19c   : > { %v1184_v42 = vsel %vm1117_vm0, %v1179_v40, 0  ;;  %2510 = vmatmul.msk.bf16.vlgmr.msrb.gmra.mxu1 %vm1117_vm0, %v1348_v41 }
 0x19d   : > { %1193 = vmatpush.bf16.xpose.msra.mxu3 %v1184_v42 }
 0x1a3   : > { %v1462_v43 = vpop.permute.xlu2 %1461  ;;  %v1174_v44 = vpop.permute.xlu1 %1173 }
 0x1a4   : > { %v1467_v45 = vsel %vm1117_vm0, %v1462_v43, 0 }
 0x1a5   : > { %1476 = vmatpush.bf16.xpose.msra.mxu1 %v1467_v45 }
 0x1ab   : > { %v1292_v46 = vpop.permute.xlu1 %1291  ;;  %v1516_v9 = vpop.permute.xlu2 %1515 }
 0x1b0   : > { %v1133_v47 = vpop.f32.mrf.mxu3 }
 0x1b1   : > { %v1138_v48 = vsel %vm1137_vm2, %v1133_v47, -inf }
 0x1b2   : > { %1139 = vmax.xlane.f32.xlu0 %v1138_v48 }
 0x1b3   : > { %v1406_v49 = vpop.permute.xlu1 %1405 }
 0x1b4   : > { %v1411_v6 = vsel %vm1117_vm0, %v1406_v49, 0 }
 0x1b8   : > { %v1135_v50 = vpop.f32.mrf.mxu3 }
 0x1bb   : > { %v1404_v51 = vpop.permute.xlu1 %1403 }
 0x1c3   : > { %v1460_v52 = vpop.permute.xlu1 %1459 }
 0x1c4   : > { %2514 = vmatmul.msk.bf16.vlgmr.msra.gmra.mxu1 %vm1117_vm0, %v1460_v52 }
 0x219   : > { %v1366_v53 = vpop.f32.mrf.mxu1 }
 0x21a   : > { %v1370_v62 = vsel %vm1137_vm2, %v1366_v53, -inf }
 0x221   : > { %v1368_v54 = vpop.f32.mrf.mxu1 }
 0x225   : > { %v1140_v55 = vpop.xlane.xlu0 %1139 }
 0x226   : > { %v1141_v56 = vsub.f32 %v1133_v47, %v1140_v55 }
 0x228   : > { %v1142_v57 = vmul.f32 1.442695, %v1141_v56 }
 0x22a   : > { %2925 = vpow2.f32 %v1142_v57 }
 0x230   : > { %v2926_v58 = vpop.eup %2925 }
 0x231   : > { %v1144_v59 = vsel %vm1137_vm2, %v2926_v58, 0.0 }
 0x232   : > { %1145 = vadd.xlane.f32.xlu0 %v1144_v59 }
 0x241   : > { %v3855_v60 = vpop.f32.mrf.mxu1 }
 0x242   : > { %v1482_v16 = vsel %vm1137_vm2, %v3855_v60, -inf }
 0x246   : > { %1235 = vrot.lane.b32.xlu0 %v1172_v28, %s3376_s8 }
 0x249   : > { %v1480_v61 = vpop.f32.mrf.mxu1 }
 0x24e   : > { %1517 = vrot.lane.b32.xlu0 %v3822_v24, %s3382_s14 }
 0x278   : > { %1371 = vmax.xlane.f32.xlu0 %v1370_v62 }
 0x2a5   : > { %v1146_v63 = vpop.xlane.xlu0 %1145 }
 0x2a6   : > { %2927 = vrcp.f32 %v1146_v63 }
 0x2ac   : > { %v2928_v0 = vpop.eup %2927 }
 0x2ad   : > { %v1148_v2 = vmul.f32 %v2928_v0, %v2926_v58 }
 0x2af   : > { %v1149_v3 = vpack.c.bf16 %v1148_v2, %v1148_v2 }
 0x2b1   : > { %2503 = vmatmul.msk.bf16.vlgmr.msrb.gmra.mxu3 %vm1137_vm2, %v1149_v3 }
 0x2b2   : > { %1308 = vmatpush.bf16.xpose.msrb.mxu3 %v1299_v4 }
 0x2b8   : > { %v1236_v5 = vpop.permute.xlu0 %1235 }
 0x2b9   : > { %2506 = vmatmul.msk.bf16.vlgmr.msrb.gmra.mxu2 %vm1117_vm0, %v1236_v5 }
 0x2c0   : > { %v1518_v7 = vpop.permute.xlu0 %1517 }
 0x2c1   : > { %2504 = vmatmul.msk.bf16.vlgmr.msra.gmra.mxu3 %vm1117_vm0, %v1174_v44  ;;  %v1523_v8 = vsel %vm1117_vm0, %v1518_v7, 0 }
 0x2c2   : > { %1420 = vmatpush.bf16.xpose.msra.mxu3 %v1411_v6 }
 0x2d1   : > { %2508 = vmatmul.msk.bf16.vlgmr.msrb.gmra.mxu3 %vm1117_vm0, %v1292_v46 }
 0x2d2   : > { %1532 = vmatpush.bf16.xpose.msrb.mxu3 %v1523_v8 }
 0x2e1   : > { %2512 = vmatmul.msk.bf16.vlgmr.msra.gmra.mxu3 %vm1117_vm0, %v1404_v51 }
 0x2eb   : > { %v1372_v26 = vpop.xlane.xlu0 %1371 }
 0x2ec   : > { %v1373_v28 = vsub.f32 %v1366_v53, %v1372_v26 }
 0x2ee   : > { %v1374_v29 = vmul.f32 1.442695, %v1373_v28 }
 0x2f0   : > { %2929 = vpow2.f32 %v1374_v29 }
 0x2f1   : > { %2516 = vmatmul.msk.bf16.vlgmr.msrb.gmra.mxu3 %vm1117_vm0, %v1516_v9 }
 0x2f6   : > { %v3884_v31 = vpop.eup %2929 }
 0x2f7   : > { %v1376_v32 = vsel %vm1137_vm2, %v3884_v31, 0.0 }
 0x334   : > { %v3870_v10 = vpop.f32.mrf.mxu3 }
 0x33c   : > { %v1168_v11 = vpop.f32.mrf.mxu3  ;;  %v1254_v12 = vpop.f32.mrf.mxu2 }
 0x33d   : > { %v1258_v13 = vsel %vm1137_vm2, %v1254_v12, -inf }
 0x33e   : > { %1259 = vmax.xlane.f32.xlu1 %v1258_v13 }
 0x344   : > { %v1195_v14 = vpop.f32.mrf.mxu3  ;;  %v1256_v15 = vpop.f32.mrf.mxu2 }
 0x345   : > { %v1199_v38 = vsel %vm1137_vm2, %v1195_v14, -inf }
 0x346   : > { %1483 = vmax.xlane.f32.xlu1 %v1482_v16 }
 0x34c   : > { %v1197_v17 = vpop.f32.mrf.mxu3 }
 0x354   : > { %v1310_v18 = vpop.f32.mrf.mxu3 }
 0x355   : > { %v1314_v19 = vsel %vm1137_vm2, %v1310_v18, -inf }
 0x356   : > { %1315 = vmax.xlane.f32.xlu2 %v1314_v19 }
 0x35c   : > { %v1312_v21 = vpop.f32.mrf.mxu3 }
 0x35f   : > { %1214 = vrot.lane.b32.xlu1 %v3877_v22, %s3377_s26 }
 0x364   : > { %v1422_v23 = vpop.f32.mrf.mxu3 }
 0x365   : > { %v1426_v24 = vsel %vm1137_vm2, %v1422_v23, -inf }
 0x366   : > { %1427 = vmax.xlane.f32.xlu2 %v1426_v24 }
 0x36c   : > { %v1424_v25 = vpop.f32.mrf.mxu3 }
 0x374   : > { %v1534_v27 = vpop.f32.mrf.mxu3 }
 0x375   : > { %v1538_v40 = vsel %vm1137_vm2, %v1534_v27, -inf }
 0x37c   : > { %v1536_v30 = vpop.f32.mrf.mxu3 }
 0x37e   : > { %1326 = vrot.lane.b32.xlu2 %v3877_v22, %s3378_s29 }
 0x386   : > { %1382 = vrot.lane.b32.xlu2 %v3877_v22, %s3379_s0 }
 0x389   : > { %1377 = vadd.xlane.f32.xlu1 %v1376_v32 }
 0x3b1   : > { %v1260_v33 = vpop.xlane.xlu1 %1259 }
 0x3b2   : > { %v1261_v34 = vsub.f32 %v1254_v12, %v1260_v33 }
 0x3b4   : > { %v1262_v35 = vmul.f32 1.442695, %v1261_v34 }
 0x3b6   : > { %2931 = vpow2.f32 %v1262_v35 }
 0x3b9   : > { %v1484_v39 = vpop.xlane.xlu1 %1483 }
 0x3ba   : > { %v1485_v16 = vsub.f32 %v3855_v60, %v1484_v39 }
 0x3bc   : > { %v2932_v36 = vpop.eup %2931  ;;  %v1486_v17 = vmul.f32 1.442695, %v1485_v16 }
 0x3bd   : > { %v1264_v37 = vsel %vm1137_vm2, %v2932_v36, 0.0 }
 0x3be   : > { %1265 = vadd.xlane.f32.xlu0 %v1264_v37 }
 0x3c6   : > { %1200 = vmax.xlane.f32.xlu0 %v1199_v38 }
 0x3c9   : > { %v1316_v41 = vpop.xlane.xlu2 %1315 }
 0x3ca   : > { %v1317_v54 = vsub.f32 %v1310_v18, %v1316_v41 }
 0x3cc   : > { %v1318_v56 = vmul.f32 1.442695, %v1317_v54 }
 0x3ce   : > { %1539 = vmax.xlane.f32.xlu0 %v1538_v40 }
 0x3d1   : > { %v1215_v42 = vpop.permute.xlu1 %1214 }
 0x3d2   : > { %v1220_v43 = vsel %vm1153_vm1, %v1215_v42, 0 }
 0x3d3   : > { %1229 = vmatpush.bf16.msrb.mxu0 %v1220_v43 }
 0x3d9   : > { %v1428_v44 = vpop.xlane.xlu2 %1427 }
 0x3da   : > { %v1429_v47 = vsub.f32 %v1422_v23, %v1428_v44 }
 0x3dc   : > { %v1430_v48 = vmul.f32 1.442695, %v1429_v47 }
 0x3de   : > { %2933 = vpow2.f32 %v1430_v48 }
 0x3e1   : > { %v1327_v45 = vpop.permute.xlu2 %1326 }
 0x3e2   : > { %v1332_v46 = vsel %vm1153_vm1, %v1327_v45, 0  ;;  %1270 = vrot.lane.b32.xlu0 %v3877_v22, %s3376_s8 }
 0x3e3   : > { %1341 = vmatpush.bf16.msra.mxu0 %v1332_v46 }
 0x3e4   : > { %v3897_v49 = vpop.eup %2933 }
 0x3e5   : > { %v1432_v50 = vsel %vm1137_vm2, %v3897_v49, 0.0 }
 0x3e9   : > { %v1383_v5 = vpop.permute.xlu2 %1382 }
 0x3ea   : > { %v1388_v9 = vsel %vm1153_vm1, %v1383_v5, 0 }
 0x3fc   : > { %v1378_v11 = vpop.xlane.xlu1 %1377 }
 0x40c   : > { %1433 = vadd.xlane.f32.xlu0 %v1432_v50 }
 0x420   : > { %1494 = vrot.lane.b32.xlu0 %v3877_v22, %s3381_s1 }
 0x431   : > { %v1266_v51 = vpop.xlane.xlu0 %1265 }
 0x439   : > { %v1201_v52 = vpop.xlane.xlu0 %1200 }
 0x43a   : > { %v1202_v53 = vsub.f32 %v1195_v14, %v1201_v52 }
 0x43c   : > { %v1203_v55 = vmul.f32 1.442695, %v1202_v53 }
 0x43e   : > { %2935 = vpow2.f32 %v1203_v55 }
 0x43f   : > { %2937 = vpow2.f32 %v1318_v56 }
 0x441   : > { %v1540_v57 = vpop.xlane.xlu0 %1539 }
 0x442   : > { %v1541_v58 = vsub.f32 %v1534_v27, %v1540_v57 }
 0x444   : > { %v2936_v59 = vpop.eup %2935  ;;  %v1542_v61 = vmul.f32 1.442695, %v1541_v58 }
 0x445   : > { %v1205_v62 = vsel %vm1137_vm2, %v2936_v59, 0.0  ;;  %v2938_v63 = vpop.eup %2937 }
 0x446   : > { %2939 = vpow2.f32 %v1542_v61  ;;  %1206 = vadd.xlane.f32.xlu2 %v1205_v62  ;;  %v1320_v2 = vsel %vm1137_vm2, %v2938_v63, 0.0  ;;  %v2717_v61 = vld [vmem:[%s3754_s18 + $0x30] sm:$0xff]  ;;  %v2716_v62 = vld [vmem:[%s3754_s18 + $0x28] sm:$0xff] }
 0x447   : > { %2941 = vrcp.f32 %v1266_v51 }
 0x448   : > { %2943 = vrcp.f32 %v1378_v11 }
 0x449   : > { %2945 = vpow2.f32 %v1486_v17 }
 0x44c   : > { %v3904_v0 = vpop.eup %2939 }
 0x44d   : > { %v1544_v3 = vsel %vm1137_vm2, %v3904_v0, 0.0  ;;  %v2942_v4 = vpop.eup %2941 }
 0x44e   : > { %1321 = vadd.xlane.f32.xlu2 %v1320_v2  ;;  %1545 = vadd.xlane.f32.xlu1 %v1544_v3  ;;  %v1268_v6 = vmul.f32 %v2942_v4, %v2932_v36  ;;  %v2944_v13 = vpop.eup %2943  ;;  %v2713_v2 = vld [vmem:[%s3754_s18 + $0x10] sm:$0xff]  ;;  %v2712_v3 = vld [vmem:[%s3754_s18 + $0x8] sm:$0xff]  ;;  %v2711_v4 = vld [vmem:[%s3754_s18] sm:$0xff] }
 0x44f   : > { %v1380_v14 = vmul.f32 %v2944_v13, %v3884_v31  ;;  %v2946_v19 = vpop.eup %2945 }
 0x450   : > { %v1269_v12 = vpack.c.bf16 %v1268_v6, %v1268_v6  ;;  %v1488_v20 = vsel %vm1137_vm2, %v2946_v19, 0.0 }
 0x451   : > { %v1381_v15 = vpack.c.bf16 %v1380_v14, %v1380_v14 }
 0x454   : > { %v1271_v7 = vpop.permute.xlu0 %1270 }
 0x455   : > { %v1276_v8 = vsel %vm1153_vm1, %v1271_v7, 0 }
 0x456   : > { %1285 = vmatpush.bf16.msra.mxu2 %v1276_v8 }
 0x459   : > { %2507 = vmatmul.msk.bf16.vlgmr.msra.gmra.mxu2 %vm1137_vm2, %v1269_v12 }
 0x45a   : > { %1397 = vmatpush.bf16.msrb.mxu2 %v1388_v9 }
 0x466   : > { %1438 = vrot.lane.b32.xlu2 %v3877_v22, %s3380_s16 }
 0x467   : > { %1550 = vrot.lane.b32.xlu1 %v3877_v22, %s3382_s14 }
 0x469   : > { %2511 = vmatmul.msk.bf16.vlgmr.msrb.gmra.mxu2 %vm1137_vm2, %v1381_v15 }
 0x47f   : > { %v1434_v18 = vpop.xlane.xlu0 %1433 }
 0x48f   : > { %1489 = vadd.xlane.f32.xlu2 %v1488_v20  ;;  %v2919_v20 = vld [vmem:[%s4190_s9] ss:$0 sm:$0xff] }
 0x492   : > { %v1495_v21 = vpop.permute.xlu0 %1494 }
 0x493   : > { %v1500_v23 = vsel %vm1153_vm1, %v1495_v21, 0 }
 0x494   : > { %1509 = vmatpush.bf16.msra.mxu2 %v1500_v23 }
 0x4b9   : > { %v1207_v24 = vpop.xlane.xlu2 %1206 }
 0x4ba   : > { %2947 = vrcp.f32 %v1207_v24 }
 0x4c0   : > { %v2948_v25 = vpop.eup %2947 }
 0x4c1   : > { %v1209_v26 = vmul.f32 %v2948_v25, %v2936_v59  ;;  %v1322_v22 = vpop.xlane.xlu2 %1321  ;;  %v1546_v31 = vpop.xlane.xlu1 %1545  ;;  %v2718_v59 = vld [vmem:[%s3754_s18 + $0x38] sm:$0xff] }
 0x4c2   : > { %2949 = vrcp.f32 %v1322_v22  ;;  %1681 = vmatpush.bf16.msrb.mxu1 %v2718_v59  ;;  %v2608_v22 = vld [vmem:[%s3758_s12 + $0x70] sm:$0xf]  ;;  %v2726_v59 = vld [vmem:[%s3758_s12 + $0x34] sm:$0xf0] }
 0x4c3   : > { %v1210_v27 = vpack.c.bf16 %v1209_v26, %v1209_v26  ;;  %2951 = vrcp.f32 %v1434_v18  ;;  %v3383_v26 = vmov 128.0  }
 0x4c4   : > { %2953 = vrcp.f32 %v1546_v31 }
 0x4c5   : > { %2505 = vmatmul.msk.bf16.vlgmr.msrb.gmra.mxu0 %vm1137_vm2, %v1210_v27  ;;  %v2734_v27 = vld [vmem:[%s3758_s12 + $0x74] sm:$0xf0] }
 0x4c6   : > { %1682 = vmatpush.bf16.msrb.mxu1 %v2717_v61  ;;  %v2725_v61 = vld [vmem:[%s3758_s12 + $0x34] sm:$0xf] }
 0x4c8   : > { %v2950_v29 = vpop.eup %2949 }
 0x4c9   : > { %v1439_v60 = vpop.permute.xlu2 %1438  ;;  %v1324_v30 = vmul.f32 %v2950_v29, %v2938_v63  ;;  %v2952_v35 = vpop.eup %2951  ;;  %v2715_v63 = vld [vmem:[%s3754_s18 + $0x20] sm:$0xff] }
 0x4ca   : > { %v1444_v28 = vsel %vm1153_vm1, %v1439_v60, 0  ;;  %v1436_v37 = vmul.f32 %v2952_v35, %v3897_v49  ;;  %v2954_v40 = vpop.eup %2953  ;;  %1683 = vmatpush.bf16.msrb.mxu1 %v2716_v62  ;;  %v2733_v60 = vld [vmem:[%s3758_s12 + $0x74] sm:$0xf]  ;;  %v2610_v29 = vld [vmem:[%s3758_s12 + $0x78] sm:$0xf0] }
 0x4cb   : > { %1453 = vmatpush.bf16.msrb.mxu0 %v1444_v28  ;;  %v1325_v32 = vpack.c.bf16 %v1324_v30, %v1324_v30  ;;  %v1548_v42 = vmul.f32 %v2954_v40, %v3904_v0  ;;  %v2714_v0 = vld [vmem:[%s3754_s18 + $0x18] sm:$0xff]  ;;  %v2609_v28 = vor.u32 %v2734_v27, %v2608_v22  ;;  %v2613_v30 = vor.u32 %v2733_v60, %v2610_v29  ;;  %v2600_v40 = vld [vmem:[%s3758_s12 + $0x60] sm:$0xf]  ;;  %v2740_v27 = vld [vmem:[%s3760_s11 + $0x28] sm:$0xff] }
 0x4cc   : > { %v1437_v38 = vpack.c.bf16 %v1436_v37, %v1436_v37  ;;  %v2748_v60 = vld [vmem:[%s3760_s11 + $0x68] sm:$0xff]  ;;  %v2747_v29 = vld [vmem:[%s3760_s11 + $0x60] sm:$0xff] }
 0x4cd   : > { %v1549_v43 = vpack.c.bf16 %v1548_v42, %v1548_v42  ;;  %1835 = vmatpush.bf16.msrb.mxu2 %v2609_v28  ;;  %1848 = vmatpush.bf16.msra.mxu3 %v2613_v30  ;;  %v2731_v42 = vld [vmem:[%s3758_s12 + $0x64] sm:$0xf] }
 0x4ce   : > { %1684 = vmatpush.bf16.msrb.mxu1 %v2715_v63  ;;  %v2578_v63 = vld [vmem:[%s3758_s12 + $0x38] sm:$0xf0]  ;;  %v2739_v28 = vld [vmem:[%s3760_s11 + $0x20] sm:$0xff] }
 0x4d2   : > { %1685 = vmatpush.bf16.msrb.mxu1 %v2714_v0  ;;  %v2581_v0 = vor.u32 %v2725_v61, %v2578_v63 }
 0x4d5   : > { %2509 = vmatmul.msk.bf16.vlgmr.msra.gmra.mxu0 %vm1137_vm2, %v1325_v32 }
 0x4d6   : > { %1686 = vmatpush.bf16.msrb.mxu1 %v2713_v2  ;;  %v2568_v2 = vld [vmem:[%s3758_s12 + $0x20] sm:$0xf] }
 0x4d9   : > { %v1551_v33 = vpop.permute.xlu1 %1550 }
 0x4da   : > { %v1556_v34 = vsel %vm1153_vm1, %v1551_v33, 0  ;;  %1687 = vmatpush.bf16.msrb.mxu1 %v2712_v3  ;;  %v2724_v3 = vld [vmem:[%s3758_s12 + $0x24] sm:$0xf0] }
 0x4db   : > { %1565 = vmatpush.bf16.msra.mxu0 %v1556_v34 }
 0x4dc   : > { %v1287_v36 = vpop.f32.mrf.mxu2 }
 0x4dd   : > { %1576 = vrot.lane.b32.xlu2 %v1287_v36, %s3381_s1 }
 0x4de   : > { %1688 = vmatpush.bf16.msrb.mxu1 %v2711_v4  ;;  %v2723_v4 = vld [vmem:[%s3758_s12 + $0x24] sm:$0xf] }
 0x4e4   : > { %v1289_v39 = vpop.f32.mrf.mxu2 }
 0x4e5   : > { %2513 = vmatmul.msk.bf16.vlgmr.msrb.gmra.mxu0 %vm1137_vm2, %v1437_v38 }
 0x4ec   : > { %v1399_v41 = vpop.f32.mrf.mxu2 }
 0x4ed   : > { %1584 = vrot.lane.b32.xlu0 %v1399_v41, %s3379_s0  ;;  %v2732_v41 = vld [vmem:[%s3758_s12 + $0x64] sm:$0xf0] }
 0x4f4   : > { %v1401_v44 = vpop.f32.mrf.mxu2 }
 0x4f5   : > { %2517 = vmatmul.msk.bf16.vlgmr.msra.gmra.mxu0 %vm1137_vm2, %v1549_v43  ;;  %v2601_v43 = vor.u32 %v2732_v41, %v2600_v40  ;;  %v2602_v44 = vld [vmem:[%s3758_s12 + $0x68] sm:$0xf0]  ;;  %v2920_v41 = vld [vmem:[%s751_s19] ss:$0 sm:$0xff] }
 0x4f7   : > { %1836 = vmatpush.bf16.msrb.mxu2 %v2601_v43 }
 0x502   : > { %v1490_v45 = vpop.xlane.xlu2 %1489 }
 0x503   : > { %2955 = vrcp.f32 %v1490_v45  ;;  %v2605_v45 = vor.u32 %v2731_v42, %v2602_v44  ;;  %v2921_v44 = vld [vmem:[%s760_s21] ss:$0 sm:$0xff] }
 0x504   : > { %2957 = vrcp.f32 %v3383_v26  ;;  %v2749_v26 = vld [vmem:[%s3760_s11 + $0x70] sm:$0xff] }
 0x505   : > { %1849 = vmatpush.bf16.msra.mxu3 %v2605_v45 }
 0x509   : > { %v2956_v46 = vpop.eup %2955 }
 0x50a   : > { %v1492_v47 = vmul.f32 %v2956_v46, %v2946_v19  ;;  %v2958_v31 = vpop.eup %2957  ;;  %v2592_v46 = vld [vmem:[%s3758_s12 + $0x50] sm:$0xf] }
 0x50b   : > { %v1700_v32 = vmul.f32 128.0, %v2958_v31  ;;  %vm1704_vm9 = vweird.f32 %v2958_v31 }
 0x50c   : > { %v1493_v48 = vpack.c.bf16 %v1492_v47, %v1492_v47  ;;  %v2730_v47 = vld [vmem:[%s3758_s12 + $0x54] sm:$0xf0] }
 0x50d   : > { %v1701_v33 = vsub.f32 1.0, %v1700_v32  ;;  %v2738_v32 = vld [vmem:[%s3760_s11 + $0x18] sm:$0xff] }
 0x50e   : > { %2515 = vmatmul.msk.bf16.vlgmr.msra.gmra.mxu2 %vm1137_vm2, %v1493_v48  ;;  %v2729_v48 = vld [vmem:[%s3758_s12 + $0x54] sm:$0xf] }
 0x537   : > { %v1577_v11 = vpop.permute.xlu2 %1576 }
 0x542   : > { %v1231_v49 = vpop.f32.mrf.mxu0 }
 0x543   : > { %1572 = vrot.lane.b32.xlu0 %v1231_v49, %s3382_s14  ;;  %v2593_v49 = vor.u32 %v2730_v47, %v2592_v46 }
 0x545   : > { %1837 = vmatpush.bf16.msrb.mxu2 %v2593_v49  ;;  %v2744_v49 = vld [vmem:[%s3760_s11 + $0x48] sm:$0xff] }
 0x54a   : > { %v1233_v50 = vpop.f32.mrf.mxu0 }
 0x54b   : > { %v2594_v50 = vld [vmem:[%s3758_s12 + $0x58] sm:$0xf0] }
 0x552   : > { %v1343_v51 = vpop.f32.mrf.mxu0 }
 0x553   : > { %1580 = vrot.lane.b32.xlu1 %v1343_v51, %s3380_s16  ;;  %v2597_v51 = vor.u32 %v2729_v48, %v2594_v50  ;;  %v2736_v48 = vld [vmem:[%s3760_s11 + $0x8] sm:$0xff]  ;;  %v2735_v50 = vld [vmem:[%s3760_s11] sm:$0xff] }
 0x555   : > { %1850 = vmatpush.bf16.msra.mxu3 %v2597_v51  ;;  %v2743_v51 = vld [vmem:[%s3760_s11 + $0x40] sm:$0xff] }
 0x55a   : > { %v1345_v52 = vpop.f32.mrf.mxu0 }
 0x55b   : > { %v2584_v52 = vld [vmem:[%s3758_s12 + $0x40] sm:$0xf] }
 0x55f   : > { %v1585_v5 = vpop.permute.xlu0 %1584 }
 0x562   : > { %v1455_v53 = vpop.f32.mrf.mxu0 }
 0x563   : > { %1588 = vrot.lane.b32.xlu1 %v1455_v53, %s3378_s29  ;;  %v2728_v53 = vld [vmem:[%s3758_s12 + $0x44] sm:$0xf0] }
 0x56a   : > { %v1457_v54 = vpop.f32.mrf.mxu0 }
 0x56b   : > { %v2727_v54 = vld [vmem:[%s3758_s12 + $0x44] sm:$0xf] }
 0x572   : > { %v1567_v55 = vpop.f32.mrf.mxu0 }
 0x573   : > { %1596 = vrot.lane.b32.xlu1 %v1567_v55, %s3377_s26  ;;  %v2585_v55 = vor.u32 %v2728_v53, %v2584_v52  ;;  %v1749_v52 = vld [vmem:[%s3738_s23] sm:$0x3] }
 0x574   : > { %v1751_v53 = vperm.slane %v1749_v52, 0 }
 0x575   : > { %1838 = vmatpush.bf16.msrb.mxu2 %v2585_v55 }
 0x57a   : > { %v1569_v56 = vpop.f32.mrf.mxu0 }
 0x57b   : > { %v2586_v56 = vld [vmem:[%s3758_s12 + $0x48] sm:$0xf0] }
 0x591   : > { %v1511_v57 = vpop.f32.mrf.mxu2 }
 0x592   : > { %1592 = vrot.lane.b32.xlu0 %v1511_v57, %s3376_s8  ;;  %v2589_v57 = vor.u32 %v2727_v54, %v2586_v56  ;;  %v1752_v54 = vperm.slane %v1749_v52, 1 }
 0x594   : > { %1851 = vmatpush.bf16.msra.mxu3 %v2589_v57 }
 0x598   : > { %1852 = vmatpush.bf16.msra.mxu3 %v2581_v0 }
 0x599   : > { %v1513_v58 = vpop.f32.mrf.mxu2 }
 0x59a   : > { %v2576_v58 = vld [vmem:[%s3758_s12 + $0x30] sm:$0xf] }
 0x59b   : > { %v2577_v62 = vor.u32 %v2726_v59, %v2576_v58 }
 0x59d   : > { %1839 = vmatpush.bf16.msrb.mxu2 %v2577_v62 }
 0x5b5   : > { %v1573_v7 = vpop.permute.xlu0 %1572 }
 0x5b6   : > { %v1599_v8 = vsel %vm1117_vm0, %v3870_v10, %v1573_v7 }
 0x5b7   : > { %v1601_v12 = vsel %vm1600_vm3, %v1599_v8, %v1577_v11  ;;  %v2560_v8 = vld [vmem:[%s3758_s12 + $0x10] sm:$0xf]  ;;  %v2721_v11 = vld [vmem:[%s3758_s12 + $0x14] sm:$0xf] }
 0x5c5   : > { %v1581_v6 = vpop.permute.xlu1 %1580 }
 0x5c6   : > { %v1603_v13 = vsel %vm1602_vm4, %v1601_v12, %v1581_v6  ;;  %v2570_v6 = vld [vmem:[%s3758_s12 + $0x28] sm:$0xf0] }
 0x5c7   : > { %v1605_v14 = vsel %vm1604_vm5, %v1603_v13, %v1585_v5  ;;  %v2569_v5 = vor.u32 %v2724_v3, %v2568_v2  ;;  %v2573_v7 = vor.u32 %v2723_v4, %v2570_v6  ;;  %v2562_v13 = vld [vmem:[%s3758_s12 + $0x18] sm:$0xf0] }
 0x5c8   : > { %v2922_v2 = vld [vmem:[%s888_s7] ss:$0 sm:$0xff] }
 0x5c9   : > { %1840 = vmatpush.bf16.msrb.mxu2 %v2569_v5  ;;  %1853 = vmatpush.bf16.msra.mxu3 %v2573_v7 }
 0x5d5   : > { %v1589_v9 = vpop.permute.xlu1 %1588 }
 0x5d6   : > { %v1607_v15 = vsel %vm1606_vm6, %v1605_v14, %v1589_v9  ;;  %v2722_v9 = vld [vmem:[%s3758_s12 + $0x14] sm:$0xf0]  ;;  %v2552_v14 = vld [vmem:[%s3758_s12] sm:$0xf] }
 0x5d7   : > { %v2561_v12 = vor.u32 %v2722_v9, %v2560_v8 }
 0x5d9   : > { %1841 = vmatpush.bf16.msrb.mxu2 %v2561_v12 }
 0x5e5   : > { %v1597_v17 = vpop.permute.xlu1 %1596 }
 0x604   : > { %v1593_v16 = vpop.permute.xlu0 %1592 }
 0x605   : > { %v1609_v18 = vsel %vm1608_vm7, %v1607_v15, %v1593_v16  ;;  %v2720_v15 = vld [vmem:[%s3758_s12 + $0x4] sm:$0xf0]  ;;  %v2565_v16 = vor.u32 %v2721_v11, %v2562_v13 }
 0x606   : > { %v1611_v10 = vsel %vm1610_vm8, %v1609_v18, %v1597_v17  ;;  %v2719_v17 = vld [vmem:[%s3758_s12 + $0x4] sm:$0xf]  ;;  %v2554_v18 = vld [vmem:[%s3758_s12 + $0x8] sm:$0xf0] }
 0x607   : > { %v1612_v19 = vpack.c.bf16 %v1611_v10, %v1611_v10  ;;  %v2553_v10 = vor.u32 %v2720_v15, %v2552_v14  ;;  %1854 = vmatpush.bf16.msra.mxu3 %v2565_v16 }
 0x609   : > { %1689 = vmatmul.bf16.vlgmr.msrb.gmra.mxu1 %v1612_v19  ;;  %v2557_v19 = vor.u32 %v2719_v17, %v2554_v18  ;;  %1842 = vmatpush.bf16.msrb.mxu2 %v2553_v10 }
 0x60b   : > { %1855 = vmatpush.bf16.msra.mxu3 %v2557_v19 }
 0x686   : > { %v1690_v21 = vpop.f32.mrf.mxu1 }
 0x687   : > { %v1691_v23 = vadd.f32 %v2919_v20, %v1690_v21  ;;  %v2742_v20 = vld [vmem:[%s3760_s11 + $0x38] sm:$0xff] }
 0x688   : > { %v2750_v21 = vld [vmem:[%s3760_s11 + $0x78] sm:$0xff]  ;;  %1997 = vmatpush.bf16.msrb.mxu0 %v2742_v20 }
 0x689   : > { %v1694_v24 = vadd.f32 %v1691_v23, %v3810_v1  ;;  %v1702_v1 = vmul.f32 %v2958_v31, %v1701_v33  ;;  %2010 = vmatpush.bf16.msra.mxu1 %v2750_v21  ;;  %v2746_v33 = vld [vmem:[%s3760_s11 + $0x58] sm:$0xff] }
 0x68b   : > { %1697 = vadd.xlane.f32.xlu0 %v1694_v24  ;;  %v1703_v34 = vadd.f32 %v2958_v31, %v1702_v1 }
 0x68d   : > { %v3957_v35 = vsel %vm1704_vm9, %v2958_v31, %v1703_v34  ;;  %2011 = vmatpush.bf16.msra.mxu1 %v2749_v26  ;;  %v2924_v26 = vld [vmem:[%s894_s24] ss:$0 sm:$0xff] }
 0x68e   : > { %v1692_v25 = vpop.f32.mrf.mxu1 }
 0x68f   : > { %v2741_v25 = vld [vmem:[%s3760_s11 + $0x30] sm:$0xff] }
 0x690   : > { %1998 = vmatpush.bf16.msrb.mxu0 %v2741_v25 }
 0x691   : > { %2012 = vmatpush.bf16.msra.mxu1 %v2748_v60 }
 0x694   : > { %1999 = vmatpush.bf16.msrb.mxu0 %v2740_v27 }
 0x695   : > { %2013 = vmatpush.bf16.msra.mxu1 %v2747_v29 }
 0x698   : > { %2000 = vmatpush.bf16.msrb.mxu0 %v2739_v28 }
 0x699   : > { %2014 = vmatpush.bf16.msra.mxu1 %v2746_v33 }
 0x69c   : > { %2001 = vmatpush.bf16.msrb.mxu0 %v2738_v32 }
 0x6fe   : > { %v1698_v36 = vpop.xlane.xlu0 %1697 }
 0x6ff   : > { %v1706_v37 = vmul.f32 %v3957_v35, %v1698_v36  ;;  %v2737_v36 = vld [vmem:[%s3760_s11 + $0x10] sm:$0xff] }
 0x700   : > { %2002 = vmatpush.bf16.msrb.mxu0 %v2737_v36 }
 0x701   : > { %v3960_v38 = vsub.f32 %v1694_v24, %v1706_v37  ;;  %v2745_v37 = vld [vmem:[%s3760_s11 + $0x50] sm:$0xff] }
 0x702   : > { %2015 = vmatpush.bf16.msra.mxu1 %v2745_v37 }
 0x703   : > { %v1708_v39 = vmul.f32 %v3960_v38, %v3960_v38 }
 0x704   : > { %2003 = vmatpush.bf16.msrb.mxu0 %v2736_v48 }
 0x705   : > { %1709 = vadd.xlane.f32.xlu2 %v1708_v39 }
 0x706   : > { %2016 = vmatpush.bf16.msra.mxu1 %v2744_v49 }
 0x708   : > { %2004 = vmatpush.bf16.msrb.mxu0 %v2735_v50 }
 0x70a   : > { %2017 = vmatpush.bf16.msra.mxu1 %v2743_v51 }
 0x778   : > { %v1710_v23 = vpop.xlane.xlu2 %1709 }
 0x779   : > { %v1711_v24 = vmul.f32 %v1710_v23, %v3957_v35 }
 0x77b   : > { %v1712_v22 = vadd.f32 1e-05, %v1711_v24  ;;  %v2923_v24 = vld [vmem:[%s891_s22] ss:$0 sm:$0xff] }
 0x77d   : > { %2959 = vrsqrt.f32 %v1712_v22  ;;  %vm1719_vm11 = vweird.f32 %v1712_v22 }
 0x783   : > { %v2960_v30 = vpop.eup %2959 }
 0x784   : > { %v1714_v31 = vmul.f32 %v2960_v30, %v1712_v22  ;;  %vm1720_vm10 = vweird.f32 %v2960_v30 }
 0x785   : > { %vm1721_vm12 = vmor %vm1719_vm11, %vm1720_vm10 }
 0x786   : > { %v1715_v1 = vmul.f32 %v2960_v30, %v1714_v31 }
 0x788   : > { %v1716_v34 = vmul.f32 0.5, %v1715_v1 }
 0x78a   : > { %v1717_v39 = vsub.f32 1.5, %v1716_v34 }
 0x78c   : > { %v1718_v40 = vmul.f32 %v2960_v30, %v1717_v39 }
 0x78e   : > { %v1722_v42 = vsel %vm1721_vm12, %v2960_v30, %v1718_v40 }
 0x78f   : > { %v1723_v43 = vmul.f32 %v1722_v42, %v3960_v38 }
 0x791   : > { %v1727_v45 = vmul.f32 %v2920_v41, %v1723_v43 }
 0x793   : > { %v1731_v46 = vadd.f32 %v2921_v44, %v1727_v45 }
 0x795   : > { %v1732_v47 = vpack.c.bf16 %v1731_v46, %v1731_v46 }
 0x797   : > { %1843 = vmatmul.bf16.vlgmr.msrb.gmra.mxu2 %v1732_v47  ;;  %1856 = vmatmul.bf16.vlgmr.msra.gmra.mxu3 %v1732_v47 }
 0x81a   : > { %v1844_v38 = vpop.f32.mrf.mxu2  ;;  %v1857_v55 = vpop.f32.mrf.mxu3 }
 0x81b   : > { %v1845_v56 = vadd.f32 %v1844_v38, %v1751_v53  ;;  %v1858_v57 = vadd.f32 %v1857_v55, %v1752_v54 }
 0x81d   : > { %v1861_v58 = vmax.f32 %v1845_v56, 0.0  ;;  %v1862_v59 = vmax.f32 %v1858_v57, 0.0 }
 0x81f   : > { %v1863_v61 = vpack.c.bf16 %v1861_v58, %v1861_v58  ;;  %v1864_v62 = vpack.c.bf16 %v1862_v59, %v1862_v59 }
 0x821   : > { %2005 = vmatmul.bf16.vlgmr.msrb.gmra.mxu0 %v1863_v61  ;;  %2018 = vmatmul.bf16.vlgmr.msra.gmra.mxu1 %v1864_v62 }
 0x822   : > { %v1846_v63 = vpop.f32.mrf.mxu2  ;;  %v1859_v0 = vpop.f32.mrf.mxu3 }
 0x89e   : > { %v2006_v3 = vpop.f32.mrf.mxu0  ;;  %v2019_v4 = vpop.f32.mrf.mxu1 }
 0x89f   : > { %v2007_v5 = vadd.f32 %v2922_v2, %v2006_v3 }
 0x8a1   : > { %v2020_v6 = vadd.f32 %v2019_v4, %v2007_v5 }
 0x8a3   : > { %v2023_v7 = vadd.f32 %v2020_v6, %v1731_v46 }
 0x8a5   : > { %2026 = vadd.xlane.f32.xlu1 %v2023_v7 }
 0x8a6   : > { %v2008_v8 = vpop.f32.mrf.mxu0  ;;  %v2021_v9 = vpop.f32.mrf.mxu1 }
 0x918   : > { %v2027_v11 = vpop.xlane.xlu1 %2026 }
 0x919   : > { %v2028_v12 = vmul.f32 %v2027_v11, %v3957_v35 }
 0x91b   : > { %v2029_v13 = vsub.f32 %v2023_v7, %v2028_v12 }
 0x91d   : > { %v2030_v14 = vmul.f32 %v2029_v13, %v2029_v13 }
 0x91f   : > { %2031 = vadd.xlane.f32.xlu0 %v2030_v14 }
 0x992   : > { %v2032_v15 = vpop.xlane.xlu0 %2031 }
 0x993   : > { %v2033_v16 = vmul.f32 %v2032_v15, %v3957_v35 }
 0x995   : > { %v2034_v17 = vadd.f32 1e-05, %v2033_v16 }
 0x997   : > { %2961 = vrsqrt.f32 %v2034_v17  ;;  %vm2041_vm14 = vweird.f32 %v2034_v17 }
 0x99d   : > { %v2962_v18 = vpop.eup %2961 }
 0x99e   : > { %v2036_v10 = vmul.f32 %v2962_v18, %v2034_v17  ;;  %vm2042_vm13 = vweird.f32 %v2962_v18 }
 0x99f   : > { %vm2043_vm15 = vmor %vm2041_vm14, %vm2042_vm13 }
 0x9a0   : > { %v2037_v19 = vmul.f32 %v2962_v18, %v2036_v10 }
 0x9a2   : > { %v2038_v20 = vmul.f32 0.5, %v2037_v19 }
 0x9a4   : > { %v2039_v21 = vsub.f32 1.5, %v2038_v20 }
 0x9a6   : > { %v2040_v23 = vmul.f32 %v2962_v18, %v2039_v21 }
 0x9a8   : > { %v2044_v25 = vsel %vm2043_vm15, %v2962_v18, %v2040_v23 }
 0x9a9   : > { %v2045_v22 = vmul.f32 %v2044_v25, %v2029_v13  ;;  %2057 = sbr.rel (%p2678_p2) target bundleno = 2480 (0x9b0), region = 128 }
 0x9ab   : > { %v2049_v27 = vmul.f32 %v2923_v24, %v2045_v22 }
 0x9ad   : > { %v2053_v60 = vadd.f32 %v2924_v26, %v2049_v27 }
 0x9af   : > { %2058 = vst [vmem:[%s3763_s5] sm:$0xff] %v2053_v60 }
 0x9b0 PF: > { %s4195_s18 = sld [smem:[#allocation23_spill]] }
 0x9b6   : > { %p2679_p4 = scmp.ne.s32.totalorder %s4195_s18, 1 }
 0x9b7   : > { %s4196_s13 = sld [smem:[#allocation47_spill]] (!%p2679_p4) }
 0x9b8   : > { %2061 = sbr.rel (%p2679_p4) target bundleno = 2760 (0xac8), region = 132  ;;  %s4197_s11 = sld [smem:[#allocation48_spill]] (!%p2679_p4) }
 0x9bd   : > { %2064 = vadd.xlane.f32.xlu0 %v2053_v60  ;;  %v2963_v42 = vld [vmem:[%s4196_s13] ss:$0 sm:$0xff] }
 0xa30   : > { %v2065_v28 = vpop.xlane.xlu0 %2064 }
 0xa31   : > { %v2066_v29 = vmul.f32 %v2065_v28, %v3957_v35 }
 0xa33   : > { %v2067_v30 = vsub.f32 %v2053_v60, %v2066_v29 }
 0xa35   : > { %v2068_v31 = vmul.f32 %v2067_v30, %v2067_v30 }
 0xa37   : > { %2069 = vadd.xlane.f32.xlu0 %v2068_v31 }
 0xaaa   : > { %v2070_v32 = vpop.xlane.xlu0 %2069 }
 0xaab   : > { %v2071_v33 = vmul.f32 %v2070_v32, %v3957_v35  ;;  %v2964_v35 = vld [vmem:[%s4197_s11] ss:$0 sm:$0xff] }
 0xaad   : > { %v2072_v1 = vadd.f32 1e-05, %v2071_v33 }
 0xaaf   : > { %2965 = vrsqrt.f32 %v2072_v1  ;;  %vm2079_vm1 = vweird.f32 %v2072_v1 }
 0xab5   : > { %v2966_v34 = vpop.eup %2965 }
 0xab6   : > { %v2074_v36 = vmul.f32 %v2966_v34, %v2072_v1  ;;  %vm2080_vm0 = vweird.f32 %v2966_v34 }
 0xab7   : > { %vm2081_vm2 = vmor %vm2079_vm1, %vm2080_vm0 }
 0xab8   : > { %v2075_v37 = vmul.f32 %v2966_v34, %v2074_v36 }
 0xaba   : > { %v2076_v39 = vmul.f32 0.5, %v2075_v37 }
 0xabc   : > { %v2077_v40 = vsub.f32 1.5, %v2076_v39 }
 0xabe   : > { %v2078_v41 = vmul.f32 %v2966_v34, %v2077_v40 }
 0xac0   : > { %v2082_v43 = vsel %vm2081_vm2, %v2966_v34, %v2078_v41 }
 0xac1   : > { %v2083_v44 = vmul.f32 %v2082_v43, %v2067_v30 }
 0xac3   : > { %v2087_v45 = vmul.f32 %v2963_v42, %v2083_v44 }
 0xac5   : > { %v2091_v46 = vadd.f32 %v2964_v35, %v2087_v45 }
 0xac7   : > { %2092 = vst [vmem:[%s3763_s5] sm:$0xff] %v2091_v46 }
 0xac8 PF: > { %s4198_s8 = sld [smem:[#allocation24_spill]]  ;;  %s2106_s14 = sshll.u32 %s3763_s5, 4  ;;  %s2107_s14 = int_to_ptr.vmem [resolvable:$true] %s2106_s14 }
 0xac9   : > { %s4199_s16 = sld [smem:[#allocation49_spill]]  ;;  %s4200_s6 = sand.u32 1, %s3343_s25  }
 0xaca   : > { %s2094_s20 = scalar_lea.sflag [#allocation4], %s4200_s6 }
 0xace   : > { %s2681_s26 = sshll.u32 %s4198_s8, 3 }
 0xacf   : > { %s2104_s1 = scalar_lea.hbm %s4199_s16, %s2681_s26  ;;  %s3257_s7 = scalar_lea.hbm %s4199_s16, 16 }
 0xad0   : > { %s2108_s2 = sshll.u32 %s2104_s1, 4  ;;  %s2109_s2 = int_to_ptr.hbm [resolvable:$true] %s2108_s2 }
 0xad1   : > { %s3251_s9 = sshra.s32 %s2109_s2, 4  ;;  %s3252_s9 = int_to_ptr.hbm [resolvable:$true] %s3251_s9 }
 0xad2   : > { %s3253_s3 = scalar_lea.hbm %s3252_s9, 8  ;;  %p3258_p8 = scmp.lt.s32.totalorder %s3252_s9, %s4199_s16 }
 0xad3   : > { %p3254_p5 = scmp.ne.s32.totalorder %s3252_s9, %s3253_s3  ;;  %p3259_p10 = scmp.lt.s32.totalorder %s3257_s7, %s3253_s3 }
 0xad5   : > { %p3255_p6 = pnand %p3254_p5, %p3669_p9  ;;  %p3260_p3 = por %p3259_p10, %p3258_p8 }
 0xad7   : > { %p3256_p7 = pneg %p3255_p6 }
 0xad9   : > { %p3261_p12 = pnand %p3260_p3, %p3256_p7 }
 0xadb   : > { %3264 = shalt.err (!%p3261_p12)
}
 0xadc   : > { %2777 = dma.vmem_to_hbm [thread:$0]  (%p3669_p9), %s2107_s14, 128, %s2109_s2, %s2094_s20  }
 0xadd PF: > { %s4201_s5 = sld [smem:[#allocation27_spill]] }
 0xade   : > { %s4202_s17 = sld [smem:[#allocation21_spill]] }
 0xae3   : > { %p2815_p1 = scmp.ge.s32.totalorder %s4201_s5, 2 }
 0xae4   : > { %s2120_s10 = sand.u32 1, %s4202_s17  }
 0xae5   : > { %p2809_p13 = pnand %p2815_p1, %p3565_p11  ;;  %s2121_s27 = scalar_lea.sflag [#allocation4], %s2120_s10 }
 0xae7   : > { %p2810_p0 = pneg %p2809_p13 }
 0xae9   : > { %3322 = dma.done.wait (%p2810_p0), %s2121_s27, 128  }
 0xaea   : > { %3324 = vsyncadd (%p2810_p0), %s2121_s27, 4294967168  ;;  %s33_s0 = sadd.s32 1, %s4201_s5   ;;  %s4204_s21 = sld [smem:[#allocation19_spill]] }
 0xaeb   : > { %p30_p2 = scmp.ge.s32.totalorder %s33_s0, 6   ;;  %s4205_s22 = sld [smem:[#allocation20_spill]] }
 0xaec   : > { %s4206_s23 = sld [smem:[#allocation30_spill]]  ;;  %s4213_s24 = smov %s3343_s25 }
 0xaed   : > { %s4207_s15 = sld [smem:[#allocation22_spill]] }
 0xaee   : > { %s4208_s26 = sld [smem:[#allocation31_spill]] }
 0xaef   : > { %s4209_s27 = sld [smem:[#allocation25_spill]]  ;;  %32 = sbr.rel (!%p30_p2) target bundleno = 28 (0x1c), region = 237 }
 0xaf0   : > { %s4210_s28 = sld [smem:[#allocation26_spill]] }
 0xaf1   : > { %s4211_s29 = sld [smem:[#allocation28_spill]] }
 0xaf2   : > { %s4212_s30 = sld [smem:[#allocation29_spill]] }
 0xaf3   : > { %s4214_s25 = smov %s4207_s15 }
 0xaf4   :  { %2127 = vsyncpa [#allocation3], 1 }
 0xaf5   :  { %2129 = vsyncpa [#allocation3 + $0x1], 1 }
 0xaf6   :  { %2130 = vsyncpa [#allocation6], 1 }
 0xaf7   :  { %2131 = vsyncpa [#allocation4], 1 }
 0xaf8   :  { %2133 = vsyncpa [#allocation4 + $0x1], 1 }

</bundles_post_ra>
